<compile_context>
chip_gen: v7x
topology: tpu7x:2x2x1
jax: 0.10.0
libtpu: 0.0.40
codegen_flags: <defaults>
</compile_context>

<pallas_src>
import math

import jax
import jax.numpy as jnp
import numpy as np
from jax.experimental import pallas as pl
from jax.experimental.pallas import tpu as pltpu

# model config (small, consistent with the module's structure)
FOURIER_ORDER = 4                       # -> init_size = 4*4*4 + 2 = 66
HIDDEN_SIZE = 32
NUM_HIDDEN_LAYERS = 3
INIT_SIZE = 4 * FOURIER_ORDER * FOURIER_ORDER + 2
_INV_SQRT2 = 1.0 / math.sqrt(2.0)

BATCH = 256


def _gelu_exact(v):
    # PyTorch nn.GELU() default is the exact (erf) formulation.
    return 0.5 * v * (1.0 + jax.lax.erf(v * _INV_SQRT2))


# ---------------------------------------------------------------------------
# kernel (feature-major layout: every activation is (features, tile_b))
# ---------------------------------------------------------------------------
def make_kernel(num_hidden_layers, hidden_size, fourier_order):
    H, O, L = hidden_size, fourier_order, num_hidden_layers

    def kernel(x_ref, wff_ref, wrest_ref, out_ref):
        tb = x_ref.shape[1]
        x = x_ref[...]                                   # (2, tb), batch on lanes
        x0 = x[0:1, :]
        x1 = x[1:2, :]

        # Batched trig: one transcendental pass per (O, tb) tensor.
        orders = jax.lax.broadcasted_iota(
            jnp.int32, (O, 1), 0).astype(jnp.float32)
        cn = jnp.cos(orders * x0)                        # (O, tb)
        sn = jnp.sin(orders * x0)
        cm = jnp.cos(orders * x1)
        sm = jnp.sin(orders * x1)

        # Expand to the (O*O, tb) product table: row index = n*O + m.
        #   *_rep : row n repeated O times (n-major)   -> value depends on n only
        #   *_til : whole block tiled O times (m-minor)-> value depends on m only
        cn_rep = jnp.concatenate(
            [jnp.broadcast_to(cn[n:n + 1, :], (O, tb)) for n in range(O)], axis=0)
        sn_rep = jnp.concatenate(
            [jnp.broadcast_to(sn[n:n + 1, :], (O, tb)) for n in range(O)], axis=0)
        cm_til = jnp.concatenate([cm] * O, axis=0)
        sm_til = jnp.concatenate([sm] * O, axis=0)

        ones = jnp.ones((1, tb), jnp.float32)            # bias row (folded biases)
        # (4*O*O + 3, tb) = (67, tb); weight columns were permuted host-side
        # to this row order, so results stay identical to the PyTorch ordering.
        ff = jnp.concatenate(
            [x,
             cn_rep * cm_til,      # cc
             cn_rep * sm_til,      # cs
             sn_rep * cm_til,      # sc
             sn_rep * sm_til,      # ss
             ones],
            axis=0)

        # One stacked matmul covers every ff-consuming layer (+ their biases).
        z_ff = jnp.dot(wff_ref[...], ff,
                       preferred_element_type=jnp.float32)   # (4H+1, tb)

        w_rest = wrest_ref[...]                          # (2L*H, H)

        def blk(k):                                      # static, sublane-aligned
            return w_rest[k * H:(k + 1) * H, :]

        def mm(w, h):
            return jnp.dot(w, h, preferred_element_type=jnp.float32)

        cur = _gelu_exact(z_ff[0:H])                     # input layer
        prev = None
        for i in range(L):
            z = z_ff[(1 + i) * H:(2 + i) * H]            # ff part + bias
            if i == 0:
                z = z + mm(blk(0), cur)
            else:
                z = z + mm(blk(2 * i - 1), cur)
                z = z + mm(blk(2 * i), prev)
            prev, cur = cur, _gelu_exact(z)

        # Output layer: ff part + bias came from the stacked matmul; the two
        # 1-row matmuls become a VPU multiply + sublane (XLU) reduction.
        out_blk = blk(2 * L - 1)                         # (H, H); cols 0/1 used
        wc = out_blk[:, 0:1]                             # w_cur_out as a column
        wp = out_blk[:, 1:2]                             # w_prev_out as a column
        y = z_ff[(1 + L) * H:(1 + L) * H + 1]            # (1, tb)
        y = y + jnp.sum(wc * cur + wp * prev, axis=0, keepdims=True)

        out_ref[...] = ((jnp.tanh(y) + 1.0) * 0.5).astype(out_ref.dtype)

    return kernel


# ---------------------------------------------------------------------------
# host-side parameter packing
# ---------------------------------------------------------------------------
def _ff_col_perm():
    """Permutation mapping the new ff row order to the original PyTorch column order.

    Original columns: [x0, x1, then for n, m: cc, cs, sc, ss]
    New rows:         [x0, x1, cc(all n,m), cs(all), sc(all), ss(all)]
    """
    OO = FOURIER_ORDER * FOURIER_ORDER
    perm = [0, 1]
    for t in range(4):                                   # cc, cs, sc, ss blocks
        perm += [2 + 4 * k + t for k in range(OO)]
    return np.asarray(perm, dtype=np.int32)


def _pack_params(params):
    """Build (W_ff_stack, W_rest) from PyTorch-layout [out, in] weights.

    W_ff_stack : (4H+1, INIT_SIZE+1)  rows = [inLayer; hidden_1..L ff parts; outLayer
                 ff part], columns permuted to the kernel's ff row order, bias folded
                 into the last column.
    W_rest     : (2L*H, H)            blocks = [w_cur_0; w_cur_1; w_prev_1; ...;
                 w_cur_{L-1}; w_prev_{L-1}; out-block] where the out-block's first two
                 columns hold w_cur_out / w_prev_out as column vectors.
    """
    H, L = HIDDEN_SIZE, NUM_HIDDEN_LAYERS
    perm = _ff_col_perm()

    def ff_rows(w_ff, b):
        return jnp.concatenate([w_ff[:, perm], b.reshape(-1, 1)], axis=1)

    w_in, b_in = params[0]                               # (H, INIT_SIZE)
    ff_stack = [ff_rows(w_in, b_in)]
    rest = []
    for i in range(L):
        w, b = params[1 + i]
        if i == 0:                                       # (H, H + INIT_SIZE)
            rest.append(w[:, :H])
            ff_stack.append(ff_rows(w[:, H:], b))
        else:                                            # (H, 2H + INIT_SIZE)
            rest += [w[:, :H], w[:, H:2 * H]]
            ff_stack.append(ff_rows(w[:, 2 * H:], b))
    w_out, b_out = params[-1]                            # (1, 2H + INIT_SIZE)
    ff_stack.append(ff_rows(w_out[:, 2 * H:], b_out))

    out_blk = jnp.zeros((H, H), jnp.float32)
    out_blk = out_blk.at[:, 0].set(w_out[0, :H]).at[:, 1].set(w_out[0, H:2 * H])
    rest.append(out_blk)

    w_ff_stacked = jnp.concatenate(ff_stack, axis=0).astype(jnp.float32)  # (4H+1, 67)
    w_rest = jnp.concatenate(rest, axis=0).astype(jnp.float32)            # (2L*H, H)
    return w_ff_stacked, w_rest


# ---------------------------------------------------------------------------
# wrapper
# ---------------------------------------------------------------------------
def fourier2d_forward(x, params, *, tile_b=None):
    # TODO(synk): optional `linmap` input remapping of the PyTorch module is None
    # in this config and not implemented.
    B = x.shape[0]
    if tile_b is None:
        # grid=1 is best on single-core v5e/v6e; on v7x pass tile_b=B//2 (a multiple
        # of 128) so both TensorCores get a "parallel" grid step.
        tile_b = B
    n_steps = pl.cdiv(B, tile_b)
    if n_steps > 1:
        assert tile_b % 128 == 0, "tile_b must be a multiple of 128 when tiling"
    B_pad = n_steps * tile_b

    xT = jnp.asarray(x, jnp.float32).T                   # (2, B): batch on lanes
    if B_pad != B:
        xT = jnp.pad(xT, ((0, 0), (0, B_pad - B)))

    w_ff_stacked, w_rest = _pack_params(params)

    in_specs = [
        pl.BlockSpec((2, tile_b), lambda i: (0, i)),
        pl.BlockSpec(w_ff_stacked.shape, lambda i: (0, 0)),
        pl.BlockSpec(w_rest.shape, lambda i: (0, 0)),
    ]

    H, L, F1 = HIDDEN_SIZE, NUM_HIDDEN_LAYERS, INIT_SIZE + 1
    mm_k = (4 * H + 1) * F1 + (2 * L - 1) * H * H + 2 * H
    cost = pl.CostEstimate(
        flops=2 * B_pad * mm_k,
        transcendentals=B_pad * (4 * FOURIER_ORDER + (L + 1) * H + 1),
        bytes_accessed=int(xT.size + w_ff_stacked.size + w_rest.size + B_pad) * 4,
    )

    out = pl.pallas_call(
        make_kernel(NUM_HIDDEN_LAYERS, HIDDEN_SIZE, FOURIER_ORDER),
        out_shape=jax.ShapeDtypeStruct((1, B_pad), jnp.float32),
        grid=(n_steps,),
        in_specs=in_specs,
        out_specs=pl.BlockSpec((1, tile_b), lambda i: (0, i)),
        compiler_params=pltpu.CompilerParams(dimension_semantics=("parallel",)),
        cost_estimate=cost,
    )(xT, w_ff_stacked, w_rest)
    return out[:, :B].T                                  # back to PyTorch's (B, 1)


# ---------------------------------------------------------------------------
# deterministic PyTorch-style init (uniform(-1/sqrt(fan_in), 1/sqrt(fan_in)))
# weights kept in PyTorch's [out, in] orientation, biases as (out,)
# ---------------------------------------------------------------------------
def init_params(key):
    H = HIDDEN_SIZE
    fan_ins = [INIT_SIZE]
    for i in range(NUM_HIDDEN_LAYERS):
        fan_ins.append(H + INIT_SIZE if i == 0 else 2 * H + INIT_SIZE)
    fan_ins.append(2 * H + INIT_SIZE)
    fan_outs = [H] * (1 + NUM_HIDDEN_LAYERS) + [1]

    params = []
    for fan_in, fan_out in zip(fan_ins, fan_outs):
        key, kw, kb = jax.random.split(key, 3)
        bound = 1.0 / math.sqrt(fan_in)
        w = jax.random.uniform(kw, (fan_out, fan_in), jnp.float32, -bound, bound)
        b = jax.random.uniform(kb, (fan_out,), jnp.float32, -bound, bound)
        params.append((w, b))
    return params


# ---------------------------------------------------------------------------
# pure-JAX reference (batch-major, concatenation-based — mirrors PyTorch code)
# ---------------------------------------------------------------------------
def reference_forward(x, params):
    x = x.astype(jnp.float32)
    x0, x1 = x[:, 0:1], x[:, 1:2]
    feats = [x]
    for n in range(FOURIER_ORDER):
        cn, sn = jnp.cos(n * x0), jnp.sin(n * x0)
        for m in range(FOURIER_ORDER):
            cm, sm = jnp.cos(m * x1), jnp.sin(m * x1)
            feats += [cn * cm, cn * sm, sn * cm, sn * sm]
    ff = jnp.concatenate(feats, axis=1)

    w, b = params[0]
    cur = _gelu_exact(ff @ w.T + b)
    prev = None
    for i in range(NUM_HIDDEN_LAYERS):
        w, b = params[1 + i]
        comb = jnp.concatenate([cur, ff] if prev is None else [cur, prev, ff], axis=1)
        prev, cur = cur, _gelu_exact(comb @ w.T + b)
    w, b = params[-1]
    comb = jnp.concatenate([cur, prev, ff], axis=1)
    y = comb @ w.T + b
    return (jnp.tanh(y) + 1.0) * 0.5


if __name__ == "__main__":
    key = jax.random.PRNGKey(0)
    key, kx, kp = jax.random.split(key, 3)

    x = jax.random.uniform(kx, (BATCH, 2), jnp.float32, -1.0, 1.0)
    params = init_params(kp)

    ref = jax.block_until_ready(reference_forward(x, params))

    # Single-step path (default: best on single-core v5e / v6e).
    out1 = jax.block_until_ready(fourier2d_forward(x, params))
    np.testing.assert_allclose(np.asarray(out1), np.asarray(ref), rtol=1e-4, atol=1e-5)

    # Two parallel steps (v7x: one per TensorCore).
    out2 = jax.block_until_ready(fourier2d_forward(x, params, tile_b=BATCH // 2))
    np.testing.assert_allclose(np.asarray(out2), np.asarray(ref), rtol=1e-4, atol=1e-5)

    print("KERNEL_OK")
</pallas_src>

<mosaic_0001>
module attributes {stable_mosaic.version = 11 : i64} {
  func.func @kernel(%arg0: i32, %arg1: memref<2x256xf32, #tpu.memory_space<vmem>>, %arg2: memref<129x67xf32, #tpu.memory_space<vmem>>, %arg3: memref<192x32xf32, #tpu.memory_space<vmem>>, %arg4: memref<1x256xf32, #tpu.memory_space<vmem>>) attributes {dimension_semantics = [#tpu.dimension_semantics<parallel>], iteration_bounds = array<i64: 1>, scalar_prefetch = 0 : i64, scratch_operands = 0 : i64, tpu.core_type = #tpu.core_type<tc>, window_params = [{transform_indices = @transform_0, window_bounds = array<i64: 2, 256>}, {pipeline_mode = #tpu.pipeline_mode<synchronous>, transform_indices = @transform_1, window_bounds = array<i64: 129, 67>}, {pipeline_mode = #tpu.pipeline_mode<synchronous>, transform_indices = @transform_2, window_bounds = array<i64: 192, 32>}, {transform_indices = @transform_3, window_bounds = array<i64: 1, 256>}]} {
    %c0 = arith.constant 0 : index
    %c0_0 = arith.constant 0 : index
    %0 = vector.load %arg1[%c0, %c0_0] : memref<2x256xf32, #tpu.memory_space<vmem>>, vector<2x256xf32>
    %1 = vector.extract_strided_slice %0 {offsets = [0, 0], sizes = [1, 256], strides = [1, 1]} : vector<2x256xf32> to vector<1x256xf32>
    %2 = vector.extract_strided_slice %0 {offsets = [1, 0], sizes = [1, 256], strides = [1, 1]} : vector<2x256xf32> to vector<1x256xf32>
    %3 = tpu.iota {dimensions = array<i32: 0>} : vector<4x1xi32>
    %4 = arith.sitofp %3 : vector<4x1xi32> to vector<4x1xf32>
    %5 = vector.broadcast %4 : vector<4x1xf32> to vector<4x256xf32>
    %6 = vector.broadcast %1 : vector<1x256xf32> to vector<4x256xf32>
    %7 = arith.mulf %5, %6 : vector<4x256xf32>
    %8 = math.cos %7 : vector<4x256xf32>
    %9 = vector.broadcast %4 : vector<4x1xf32> to vector<4x256xf32>
    %10 = vector.broadcast %1 : vector<1x256xf32> to vector<4x256xf32>
    %11 = arith.mulf %9, %10 : vector<4x256xf32>
    %12 = math.sin %11 : vector<4x256xf32>
    %13 = vector.broadcast %4 : vector<4x1xf32> to vector<4x256xf32>
    %14 = vector.broadcast %2 : vector<1x256xf32> to vector<4x256xf32>
    %15 = arith.mulf %13, %14 : vector<4x256xf32>
    %16 = math.cos %15 : vector<4x256xf32>
    %17 = vector.broadcast %4 : vector<4x1xf32> to vector<4x256xf32>
    %18 = vector.broadcast %2 : vector<1x256xf32> to vector<4x256xf32>
    %19 = arith.mulf %17, %18 : vector<4x256xf32>
    %20 = math.sin %19 : vector<4x256xf32>
    %21 = vector.extract_strided_slice %8 {offsets = [0, 0], sizes = [1, 256], strides = [1, 1]} : vector<4x256xf32> to vector<1x256xf32>
    %22 = vector.shape_cast %21 : vector<1x256xf32> to vector<1x256xf32>
    %23 = vector.broadcast %22 : vector<1x256xf32> to vector<4x256xf32>
    %24 = vector.extract_strided_slice %8 {offsets = [1, 0], sizes = [1, 256], strides = [1, 1]} : vector<4x256xf32> to vector<1x256xf32>
    %25 = vector.shape_cast %24 : vector<1x256xf32> to vector<1x256xf32>
    %26 = vector.broadcast %25 : vector<1x256xf32> to vector<4x256xf32>
    %27 = vector.extract_strided_slice %8 {offsets = [2, 0], sizes = [1, 256], strides = [1, 1]} : vector<4x256xf32> to vector<1x256xf32>
    %28 = vector.shape_cast %27 : vector<1x256xf32> to vector<1x256xf32>
    %29 = vector.broadcast %28 : vector<1x256xf32> to vector<4x256xf32>
    %30 = vector.extract_strided_slice %8 {offsets = [3, 0], sizes = [1, 256], strides = [1, 1]} : vector<4x256xf32> to vector<1x256xf32>
    %31 = vector.shape_cast %30 : vector<1x256xf32> to vector<1x256xf32>
    %32 = vector.broadcast %31 : vector<1x256xf32> to vector<4x256xf32>
    %33 = tpu.concatenate %23, %26, %29, %32 in 0 : vector<4x256xf32>, vector<4x256xf32>, vector<4x256xf32>, vector<4x256xf32> -> vector<16x256xf32>
    %34 = vector.extract_strided_slice %12 {offsets = [0, 0], sizes = [1, 256], strides = [1, 1]} : vector<4x256xf32> to vector<1x256xf32>
    %35 = vector.shape_cast %34 : vector<1x256xf32> to vector<1x256xf32>
    %36 = vector.broadcast %35 : vector<1x256xf32> to vector<4x256xf32>
    %37 = vector.extract_strided_slice %12 {offsets = [1, 0], sizes = [1, 256], strides = [1, 1]} : vector<4x256xf32> to vector<1x256xf32>
    %38 = vector.shape_cast %37 : vector<1x256xf32> to vector<1x256xf32>
    %39 = vector.broadcast %38 : vector<1x256xf32> to vector<4x256xf32>
    %40 = vector.extract_strided_slice %12 {offsets = [2, 0], sizes = [1, 256], strides = [1, 1]} : vector<4x256xf32> to vector<1x256xf32>
    %41 = vector.shape_cast %40 : vector<1x256xf32> to vector<1x256xf32>
    %42 = vector.broadcast %41 : vector<1x256xf32> to vector<4x256xf32>
    %43 = vector.extract_strided_slice %12 {offsets = [3, 0], sizes = [1, 256], strides = [1, 1]} : vector<4x256xf32> to vector<1x256xf32>
    %44 = vector.shape_cast %43 : vector<1x256xf32> to vector<1x256xf32>
    %45 = vector.broadcast %44 : vector<1x256xf32> to vector<4x256xf32>
    %46 = tpu.concatenate %36, %39, %42, %45 in 0 : vector<4x256xf32>, vector<4x256xf32>, vector<4x256xf32>, vector<4x256xf32> -> vector<16x256xf32>
    %47 = tpu.concatenate %16, %16, %16, %16 in 0 : vector<4x256xf32>, vector<4x256xf32>, vector<4x256xf32>, vector<4x256xf32> -> vector<16x256xf32>
    %48 = tpu.concatenate %20, %20, %20, %20 in 0 : vector<4x256xf32>, vector<4x256xf32>, vector<4x256xf32>, vector<4x256xf32> -> vector<16x256xf32>
    %cst = arith.constant 1.000000e+00 : f32
    %49 = vector.broadcast %cst : f32 to vector<1x256xf32>
    %50 = arith.mulf %33, %47 : vector<16x256xf32>
    %51 = arith.mulf %33, %48 : vector<16x256xf32>
    %52 = arith.mulf %46, %47 : vector<16x256xf32>
    %53 = arith.mulf %46, %48 : vector<16x256xf32>
    %54 = tpu.concatenate %0, %50, %51, %52, %53, %49 in 0 : vector<2x256xf32>, vector<16x256xf32>, vector<16x256xf32>, vector<16x256xf32>, vector<16x256xf32>, vector<1x256xf32> -> vector<67x256xf32>
    %c0_1 = arith.constant 0 : index
    %c0_2 = arith.constant 0 : index
    %55 = vector.load %arg2[%c0_1, %c0_2] : memref<129x67xf32, #tpu.memory_space<vmem>>, vector<129x67xf32>
    %cst_3 = arith.constant dense<0.000000e+00> : vector<129x256xf32>
    %56 = tpu.matmul %55, %54, %cst_3 {dimension_numbers = #tpu.dot_dimension_numbers<[1], [0], [0], [1], [0, 0, 1, 1], [], []>} : vector<129x67xf32>, vector<67x256xf32>, vector<129x256xf32> -> vector<129x256xf32>
    %c0_4 = arith.constant 0 : index
    %c0_5 = arith.constant 0 : index
    %57 = vector.load %arg3[%c0_4, %c0_5] : memref<192x32xf32, #tpu.memory_space<vmem>>, vector<192x32xf32>
    %58 = vector.extract_strided_slice %56 {offsets = [0, 0], sizes = [32, 256], strides = [1, 1]} : vector<129x256xf32> to vector<32x256xf32>
    %cst_6 = arith.constant 5.000000e-01 : f32
    %59 = vector.broadcast %cst_6 : f32 to vector<32x256xf32>
    %60 = arith.mulf %59, %58 : vector<32x256xf32>
    %cst_7 = arith.constant 0.707106769 : f32
    %61 = vector.broadcast %cst_7 : f32 to vector<32x256xf32>
    %62 = arith.mulf %58, %61 : vector<32x256xf32>
    %63 = math.erf %62 : vector<32x256xf32>
    %cst_8 = arith.constant 1.000000e+00 : f32
    %64 = vector.broadcast %cst_8 : f32 to vector<32x256xf32>
    %65 = arith.addf %64, %63 : vector<32x256xf32>
    %66 = arith.mulf %60, %65 : vector<32x256xf32>
    %67 = vector.extract_strided_slice %56 {offsets = [32, 0], sizes = [32, 256], strides = [1, 1]} : vector<129x256xf32> to vector<32x256xf32>
    %68 = vector.extract_strided_slice %57 {offsets = [0, 0], sizes = [32, 32], strides = [1, 1]} : vector<192x32xf32> to vector<32x32xf32>
    %cst_9 = arith.constant dense<0.000000e+00> : vector<32x256xf32>
    %69 = tpu.matmul %68, %66, %cst_9 {dimension_numbers = #tpu.dot_dimension_numbers<[1], [0], [0], [1], [0, 0, 1, 1], [], []>} : vector<32x32xf32>, vector<32x256xf32>, vector<32x256xf32> -> vector<32x256xf32>
    %70 = arith.addf %67, %69 : vector<32x256xf32>
    %cst_10 = arith.constant 5.000000e-01 : f32
    %71 = vector.broadcast %cst_10 : f32 to vector<32x256xf32>
    %72 = arith.mulf %71, %70 : vector<32x256xf32>
    %cst_11 = arith.constant 0.707106769 : f32
    %73 = vector.broadcast %cst_11 : f32 to vector<32x256xf32>
    %74 = arith.mulf %70, %73 : vector<32x256xf32>
    %75 = math.erf %74 : vector<32x256xf32>
    %cst_12 = arith.constant 1.000000e+00 : f32
    %76 = vector.broadcast %cst_12 : f32 to vector<32x256xf32>
    %77 = arith.addf %76, %75 : vector<32x256xf32>
    %78 = arith.mulf %72, %77 : vector<32x256xf32>
    %79 = vector.extract_strided_slice %56 {offsets = [64, 0], sizes = [32, 256], strides = [1, 1]} : vector<129x256xf32> to vector<32x256xf32>
    %80 = vector.extract_strided_slice %57 {offsets = [32, 0], sizes = [32, 32], strides = [1, 1]} : vector<192x32xf32> to vector<32x32xf32>
    %cst_13 = arith.constant dense<0.000000e+00> : vector<32x256xf32>
    %81 = tpu.matmul %80, %78, %cst_13 {dimension_numbers = #tpu.dot_dimension_numbers<[1], [0], [0], [1], [0, 0, 1, 1], [], []>} : vector<32x32xf32>, vector<32x256xf32>, vector<32x256xf32> -> vector<32x256xf32>
    %82 = arith.addf %79, %81 : vector<32x256xf32>
    %83 = vector.extract_strided_slice %57 {offsets = [64, 0], sizes = [32, 32], strides = [1, 1]} : vector<192x32xf32> to vector<32x32xf32>
    %cst_14 = arith.constant dense<0.000000e+00> : vector<32x256xf32>
    %84 = tpu.matmul %83, %66, %cst_14 {dimension_numbers = #tpu.dot_dimension_numbers<[1], [0], [0], [1], [0, 0, 1, 1], [], []>} : vector<32x32xf32>, vector<32x256xf32>, vector<32x256xf32> -> vector<32x256xf32>
    %85 = arith.addf %82, %84 : vector<32x256xf32>
    %cst_15 = arith.constant 5.000000e-01 : f32
    %86 = vector.broadcast %cst_15 : f32 to vector<32x256xf32>
    %87 = arith.mulf %86, %85 : vector<32x256xf32>
    %cst_16 = arith.constant 0.707106769 : f32
    %88 = vector.broadcast %cst_16 : f32 to vector<32x256xf32>
    %89 = arith.mulf %85, %88 : vector<32x256xf32>
    %90 = math.erf %89 : vector<32x256xf32>
    %cst_17 = arith.constant 1.000000e+00 : f32
    %91 = vector.broadcast %cst_17 : f32 to vector<32x256xf32>
    %92 = arith.addf %91, %90 : vector<32x256xf32>
    %93 = arith.mulf %87, %92 : vector<32x256xf32>
    %94 = vector.extract_strided_slice %56 {offsets = [96, 0], sizes = [32, 256], strides = [1, 1]} : vector<129x256xf32> to vector<32x256xf32>
    %95 = vector.extract_strided_slice %57 {offsets = [96, 0], sizes = [32, 32], strides = [1, 1]} : vector<192x32xf32> to vector<32x32xf32>
    %cst_18 = arith.constant dense<0.000000e+00> : vector<32x256xf32>
    %96 = tpu.matmul %95, %93, %cst_18 {dimension_numbers = #tpu.dot_dimension_numbers<[1], [0], [0], [1], [0, 0, 1, 1], [], []>} : vector<32x32xf32>, vector<32x256xf32>, vector<32x256xf32> -> vector<32x256xf32>
    %97 = arith.addf %94, %96 : vector<32x256xf32>
    %98 = vector.extract_strided_slice %57 {offsets = [128, 0], sizes = [32, 32], strides = [1, 1]} : vector<192x32xf32> to vector<32x32xf32>
    %cst_19 = arith.constant dense<0.000000e+00> : vector<32x256xf32>
    %99 = tpu.matmul %98, %78, %cst_19 {dimension_numbers = #tpu.dot_dimension_numbers<[1], [0], [0], [1], [0, 0, 1, 1], [], []>} : vector<32x32xf32>, vector<32x256xf32>, vector<32x256xf32> -> vector<32x256xf32>
    %100 = arith.addf %97, %99 : vector<32x256xf32>
    %cst_20 = arith.constant 5.000000e-01 : f32
    %101 = vector.broadcast %cst_20 : f32 to vector<32x256xf32>
    %102 = arith.mulf %101, %100 : vector<32x256xf32>
    %cst_21 = arith.constant 0.707106769 : f32
    %103 = vector.broadcast %cst_21 : f32 to vector<32x256xf32>
    %104 = arith.mulf %100, %103 : vector<32x256xf32>
    %105 = math.erf %104 : vector<32x256xf32>
    %cst_22 = arith.constant 1.000000e+00 : f32
    %106 = vector.broadcast %cst_22 : f32 to vector<32x256xf32>
    %107 = arith.addf %106, %105 : vector<32x256xf32>
    %108 = arith.mulf %102, %107 : vector<32x256xf32>
    %109 = vector.extract_strided_slice %57 {offsets = [160, 0], sizes = [32, 32], strides = [1, 1]} : vector<192x32xf32> to vector<32x32xf32>
    %110 = vector.extract_strided_slice %109 {offsets = [0, 0], sizes = [32, 1], strides = [1, 1]} : vector<32x32xf32> to vector<32x1xf32>
    %111 = vector.extract_strided_slice %109 {offsets = [0, 1], sizes = [32, 1], strides = [1, 1]} : vector<32x32xf32> to vector<32x1xf32>
    %112 = vector.extract_strided_slice %56 {offsets = [128, 0], sizes = [1, 256], strides = [1, 1]} : vector<129x256xf32> to vector<1x256xf32>
    %113 = vector.broadcast %110 : vector<32x1xf32> to vector<32x256xf32>
    %114 = arith.mulf %113, %108 : vector<32x256xf32>
    %115 = vector.broadcast %111 : vector<32x1xf32> to vector<32x256xf32>
    %116 = arith.mulf %115, %93 : vector<32x256xf32>
    %117 = arith.addf %114, %116 : vector<32x256xf32>
    %cst_23 = arith.constant dense<0.000000e+00> : vector<256xf32>
    %118 = vector.multi_reduction <add>, %117, %cst_23 [0] : vector<32x256xf32> to vector<256xf32>
    %119 = vector.shape_cast %118 : vector<256xf32> to vector<1x256xf32>
    %120 = arith.addf %112, %119 : vector<1x256xf32>
    %121 = math.tanh %120 : vector<1x256xf32>
    %cst_24 = arith.constant 1.000000e+00 : f32
    %122 = vector.broadcast %cst_24 : f32 to vector<1x256xf32>
    %123 = arith.addf %121, %122 : vector<1x256xf32>
    %cst_25 = arith.constant 5.000000e-01 : f32
    %124 = vector.broadcast %cst_25 : f32 to vector<1x256xf32>
    %125 = arith.mulf %123, %124 : vector<1x256xf32>
    %c0_26 = arith.constant 0 : index
    %c0_27 = arith.constant 0 : index
    %126 = vector.load %arg4[%c0_26, %c0_27] : memref<1x256xf32, #tpu.memory_space<vmem>>, vector<1x256xf32>
    tpu.vector_store %arg4[%c0_26, %c0_27], %125 {strides = array<i32>} : memref<1x256xf32, #tpu.memory_space<vmem>>, vector<1x256xf32>,
    return
  }
  func.func @transform_0(%arg0: i32) -> (i32, i32) {
    %c0_i32 = arith.constant 0 : i32
    %c0_i32_0 = arith.constant 0 : i32
    return %c0_i32, %arg0 : i32, i32
  }
  func.func @transform_1(%arg0: i32) -> (i32, i32) {
    %c0_i32 = arith.constant 0 : i32
    %c0_i32_0 = arith.constant 0 : i32
    %c0_i32_1 = arith.constant 0 : i32
    return %c0_i32, %c0_i32_0 : i32, i32
  }
  func.func @transform_2(%arg0: i32) -> (i32, i32) {
    %c0_i32 = arith.constant 0 : i32
    %c0_i32_0 = arith.constant 0 : i32
    %c0_i32_1 = arith.constant 0 : i32
    return %c0_i32, %c0_i32_0 : i32, i32
  }
  func.func @transform_3(%arg0: i32) -> (i32, i32) {
    %c0_i32 = arith.constant 0 : i32
    %c0_i32_0 = arith.constant 0 : i32
    return %c0_i32, %arg0 : i32, i32
  }
}

</mosaic_0001>

<bundles_post_ra>
// kernel: tpu_custom_call.1
= control target key start
LH: loop header
LB: loop body
LE: loop exit
PB: predicated region body
PF: predicated region fallthrough
CT: control target
= control target key end

     0   :  { %v16_v0 = vlaneseq  ;;  %s3295_s0 = inlined_call_operand.vmem [shape: f32[2,256], index: 0, kind: input, shape index: {}]   ;;  %s3296_s1 = inlined_call_operand.vmem [shape: f32[129,67], index: 1, kind: input, shape index: {}]   ;;  %s3297_s2 = inlined_call_operand.vmem [shape: f32[192,32], index: 2, kind: input, shape index: {}]   ;;  %s3298_s3 = inlined_call_operand.hbm [shape: f32[1,256], index: 3, kind: output, shape index: {}]  }
   0x1   :  { %v2518_v2 = vld [vmem:[%s3295_s0] sm:$0xf] }
   0x2   :  { %v2513_v1 = vshrl.u32 %v16_v0, 7 }
   0x3   :  { %8 = vsyncpa [#allocation3], 0  ;;  %v2480_v38 = vmov 1983009808   ;;  %v2481_v45 = vmov 683565275  }
   0x4   :  { %v2521_v3 = vsub.s32 0, %v2513_v1  ;;  %v2524_v4 = vsub.s32 2, %v2513_v1  ;;  %v2527_v5 = vsub.s32 1, %v2513_v1  ;;  %v2530_v6 = vsub.s32 3, %v2513_v1 }
   0x5   :  { %v18_v7 = vcvt.s32.f32 %v2513_v1  ;;  %v2560_v39 = vunpack.c.l.s4 %v2480_v38  ;;  %v2482_v47 = vmov 2475754826   ;;  %v2483_v51 = vmov 2131351028  }
   0x6   :  { %v23_v8 = vrot.slane %v2518_v2, %v2521_v3  ;;  %v27_v9 = vrot.slane %v2518_v2, %v2524_v4  ;;  %v461_v10 = vrot.slane %v2518_v2, %v2530_v6  ;;  %v457_v24 = vrot.slane %v2518_v2, %v2527_v5 }
   0x7   :  { %v2484_v53 = vmov 2102212464   ;;  %v2485_v55 = vmov 920167782   ;;  %v2486_v62 = vmov 1326507024  }
   0x8   :  { %v33_v11 = vrot.slane %v23_v8, %v2521_v3  ;;  %v37_v12 = vrot.slane %v27_v9, %v2521_v3  ;;  %v471_v13 = vrot.slane %v461_v10, %v2527_v5  ;;  %v467_v33 = vrot.slane %v457_v24, %v2527_v5 }
   0xa   :  { %v2542_v14 = vmul.f32 %v33_v11, %v18_v7  ;;  %v2544_v15 = vmul.f32 %v37_v12, %v18_v7  ;;  %v2546_v16 = vmul.f32 %v471_v13, %v18_v7  ;;  %v2564_v42 = vmul.f32 %v467_v33, %v18_v7 }
   0xc   :  { %v43_v17 = vand.u32 2139095040, %v2542_v14  ;;  %v143_v18 = vand.u32 2147483647, %v2544_v15  ;;  %v146_v19 = vand.u32 2139095040, %v2544_v15  ;;  %v577_v20 = vand.u32 2147483647, %v2546_v16 }
   0xd   :  { %v580_v25 = vand.u32 2139095040, %v2546_v16 }
   0xe   :  { %v44_v21 = vshrl.u32 %v43_v17, 23  ;;  %v147_v22 = vshrl.u32 %v146_v19, 23  ;;  %v150_v23 = vand.u32 8388607, %v143_v18  ;;  %v584_v28 = vand.u32 8388607, %v577_v20 }
   0xf   :  { %v581_v29 = vshrl.u32 %v580_v25, 23 }
  0x10   :  { %v2174_v26 = vadd.s32 4294967169, %v44_v21  ;;  %v2178_v27 = vadd.s32 4294967169, %v147_v22  ;;  %v151_v32 = vor.u32 8388608, %v150_v23  ;;  %v585_v35 = vor.u32 8388608, %v584_v28 }
  0x11   :  { %v2194_v34 = vadd.s32 4294967169, %v581_v29 }
  0x12   :  { %v50_v30 = vadd.s32 1, %v2174_v26  ;;  %v153_v31 = vadd.s32 1, %v2178_v27  ;;  %v2562_v41 = vshll.u32 %v151_v32, 8  ;;  %v2568_v49 = vshll.u32 %v585_v35, 8 }
  0x13   :  { %v587_v43 = vadd.s32 1, %v2194_v34 }
  0x14   :  { %vm154_vm0 = vcmp.gt.s32.totalorder %v153_v31, 0  ;;  %vm51_vm1 = vcmp.gt.s32.totalorder %v50_v30, 0 }
  0x15   :  { %v155_v36 = vsel %vm154_vm0, %v153_v31, 0  ;;  %v2570_v50 = vsel %vm51_vm1, %v50_v30, 0  ;;  %vm588_vm3 = vcmp.gt.s32.totalorder %v587_v43, 0  ;;  %vm145_vm0 = vcmp.lt.s32.totalorder %v2544_v15, 0 }
  0x16   :  { %v157_v37 = vand.u32 31, %v155_v36  ;;  %v156_v40 = vshrl.u32 %v155_v36, 5  ;;  %v589_v24 = vsel %vm588_vm3, %v587_v43, 0  ;;  %v2583_v25 = vand.u32 31, %v2570_v50 }
  0x17   :  { %v590_v28 = vshrl.u32 %v589_v24, 5  ;;  %v591_v32 = vand.u32 31, %v589_v24 }
  0x18   :  { %v158_v44 = vsub.s32 32, %v157_v37  ;;  %v160_v46 = vshll.u32 %v2481_v45, %v157_v37  ;;  %v163_v48 = vshll.u32 %v2482_v47, %v157_v37  ;;  %v166_v52 = vshll.u32 %v2483_v51, %v157_v37 }
  0x19   :  { %v169_v54 = vshll.u32 %v2484_v53, %v157_v37  ;;  %v172_v56 = vshll.u32 %v2485_v55, %v157_v37  ;;  %vm175_vm2 = vcmp.lt.s32.totalorder %v156_v40, 1  ;;  %vm178_vm4 = vcmp.lt.s32.totalorder %v156_v40, 4 }
  0x1a   :  { %v159_v57 = vshrl.u32 %v2481_v45, %v158_v44  ;;  %v161_v58 = vshrl.u32 %v2482_v47, %v158_v44  ;;  %v164_v59 = vshrl.u32 %v2483_v51, %v158_v44  ;;  %v167_v60 = vshrl.u32 %v2484_v53, %v158_v44 }
  0x1b   :  { %v170_v61 = vshrl.u32 %v2485_v55, %v158_v44  ;;  %v173_v63 = vshrl.u32 %v2486_v62, %v158_v44  ;;  %vm176_vm5 = vcmp.lt.s32.totalorder %v156_v40, 2  ;;  %vm177_vm6 = vcmp.lt.s32.totalorder %v156_v40, 3 }
  0x1c   :  { %v162_v7 = vor.u32 %v161_v58, %v160_v46  ;;  %v165_v8 = vor.u32 %v164_v59, %v163_v48  ;;  %v168_v9 = vor.u32 %v167_v60, %v166_v52  ;;  %v592_v37 = vsub.s32 32, %v591_v32 }
  0x1d   :  { %v171_v10 = vor.u32 %v170_v61, %v169_v54  ;;  %v174_v11 = vor.u32 %v173_v63, %v172_v56  ;;  %v594_v38 = vshll.u32 %v2481_v45, %v591_v32  ;;  %v597_v43 = vshll.u32 %v2482_v47, %v591_v32 }
  0x1e   :  { %v179_v12 = vsel %vm175_vm2, %v159_v57, %v162_v7  ;;  %v180_v13 = vsel %vm178_vm4, %v168_v9, 2102212464  ;;  %v183_v17 = vsel %vm175_vm2, %v162_v7, %v165_v8  ;;  %v187_v19 = vsel %vm175_vm2, %v165_v8, %v168_v9 }
  0x1f   :  { %v181_v21 = vsel %vm177_vm6, %v165_v8, %v180_v13  ;;  %v184_v22 = vsel %vm178_vm4, %v171_v10, 920167782  ;;  %v188_v23 = vsel %vm178_vm4, %v174_v11, 1326507024  ;;  %v600_v44 = vshll.u32 %v2483_v51, %v591_v32 }
  0x20   :  { %v185_v26 = vsel %vm177_vm6, %v168_v9, %v184_v22  ;;  %v189_v27 = vsel %vm177_vm6, %v171_v10, %v188_v23  ;;  %v182_v29 = vsel %vm176_vm5, %v179_v12, %v181_v21  ;;  %v603_v46 = vshll.u32 %v2484_v53, %v591_v32 }
  0x21   :  { %v186_v30 = vsel %vm176_vm5, %v183_v17, %v185_v26  ;;  %v190_v31 = vsel %vm176_vm5, %v187_v19, %v189_v27  ;;  %v198_v40 = vmul.u32 %v2562_v41, %v182_v29  ;;  %v606_v48 = vshll.u32 %v2485_v55, %v591_v32 }
  0x22   :  { %v2589_v33 = vmul.u32.u64.low %v2562_v41, %v190_v31  ;;  %v2590_v34 = vmul.u32.u64.high %v2562_v41, %v190_v31, %v2589_v33  ;;  %v2593_v35 = vmul.u32.u64.low %v2562_v41, %v186_v30  ;;  %v2594_v36 = vmul.u32.u64.high %v2562_v41, %v186_v30, %v2593_v35 }
  0x23   :  { %vm609_vm7 = vcmp.lt.s32.totalorder %v590_v28, 1  ;;  %v593_v52 = vshrl.u32 %v2481_v45, %v592_v37  ;;  %v595_v54 = vshrl.u32 %v2482_v47, %v592_v37  ;;  %v598_v56 = vshrl.u32 %v2483_v51, %v592_v37 }
  0x24   :  { %v601_v57 = vshrl.u32 %v2484_v53, %v592_v37  ;;  %vm200_vm8 = vc.u32 %v2590_v34, %v2593_v35  ;;  %v201_v58 = vadd.s32 1, %v2594_v36  ;;  %v604_v41 = vshrl.u32 %v2485_v55, %v592_v37 }
  0x25   :  { %vm610_vm9 = vcmp.lt.s32.totalorder %v590_v28, 2  ;;  %v596_v59 = vor.u32 %v595_v54, %v594_v38  ;;  %v599_v60 = vor.u32 %v598_v56, %v597_v43  ;;  %v607_v63 = vshrl.u32 %v2486_v62, %v592_v37 }
  0x26   :  { %v602_v61 = vor.u32 %v601_v57, %v600_v44  ;;  %v202_v7 = vsel %vm200_vm8, %v201_v58, %v2594_v36  ;;  %v605_v8 = vor.u32 %v604_v41, %v603_v46  ;;  %vm611_vm10 = vcmp.lt.s32.totalorder %v590_v28, 3 }
  0x27   :  { %vm612_vm11 = vcmp.lt.s32.totalorder %v590_v28, 4  ;;  %v203_v9 = vadd.s32 %v202_v7, %v198_v40  ;;  %v608_v10 = vor.u32 %v607_v63, %v606_v48  ;;  %v613_v11 = vsel %vm609_vm7, %v593_v52, %v596_v59 }
  0x28   :  { %v614_v12 = vsel %vm612_vm11, %v602_v61, 2102212464  ;;  %v617_v17 = vsel %vm609_vm7, %v596_v59, %v599_v60  ;;  %v618_v19 = vsel %vm612_vm11, %v605_v8, 920167782  ;;  %v621_v21 = vsel %vm609_vm7, %v599_v60, %v602_v61 }
  0x29   :  { %v615_v13 = vsel %vm611_vm10, %v599_v60, %v614_v12  ;;  %v204_v22 = vadd.s32 536870912, %v203_v9  ;;  %v477_v23 = vand.u32 2139095040, %v2564_v42  ;;  %v619_v24 = vsel %vm611_vm10, %v602_v61, %v618_v19 }
  0x2a   :  { %v622_v26 = vsel %vm612_vm11, %v608_v10, 1326507024  ;;  %v55_v27 = vsub.s32 32, %v2583_v25  ;;  %v616_v29 = vsel %vm610_vm9, %v613_v11, %v615_v13  ;;  %v620_v30 = vsel %vm610_vm9, %v617_v17, %v619_v24 }
  0x2b   :  { %v623_v31 = vsel %vm611_vm10, %v605_v8, %v622_v26  ;;  %v2623_v32 = vshrl.u32 %v204_v22, 30  ;;  %v2627_v36 = vmul.u32.u64.low %v2568_v49, %v620_v30  ;;  %v2628_v37 = vmul.u32.u64.high %v2568_v49, %v620_v30, %v2627_v36 }
  0x2c   :  { %v624_v33 = vsel %vm610_vm9, %v621_v21, %v623_v31  ;;  %v478_v40 = vshrl.u32 %v477_v23, 23  ;;  %v632_v46 = vmul.u32 %v2568_v49, %v616_v29  ;;  %v995_v48 = vunpack.c.0.s8 %v2560_v39 }
  0x2d   :  { %v2632_v38 = vmul.u32.u64.low %v2568_v49, %v624_v33  ;;  %v2633_v43 = vmul.u32.u64.high %v2568_v49, %v624_v33, %v2632_v38  ;;  %v206_v44 = vshll.u32 %v2623_v32, 30  ;;  %v40_v52 = vand.u32 2147483647, %v2542_v14 }
  0x2e   :  { %v635_v54 = vadd.s32 1, %v2628_v37  ;;  %v57_v56 = vshll.u32 %v2481_v45, %v2583_v25  ;;  %v58_v57 = vshrl.u32 %v2482_v47, %v55_v27  ;;  %v60_v58 = vshll.u32 %v2482_v47, %v2583_v25 }
  0x2f   :  { %v2639_v28 = vsub.s32 %v203_v9, %v206_v44  ;;  %vm634_vm12 = vc.u32 %v2633_v43, %v2627_v36  ;;  %v61_v49 = vshrl.u32 %v2483_v51, %v55_v27  ;;  %v66_v39 = vshll.u32 %v2484_v53, %v2583_v25 }
  0x30   :  { %v636_v59 = vsel %vm634_vm12, %v635_v54, %v2628_v37  ;;  %v63_v60 = vshll.u32 %v2483_v51, %v2583_v25  ;;  %v64_v61 = vshrl.u32 %v2484_v53, %v55_v27  ;;  %v2658_v63 = vshrl.u32 %v2570_v50, 5 }
  0x31   :  { %v209_v41 = vsub.s32 0, %v2639_v28  ;;  %v2190_v7 = vadd.s32 4294967169, %v478_v40  ;;  %v637_v8 = vadd.s32 %v636_v59, %v632_v46  ;;  %v67_v9 = vshrl.u32 %v2485_v55, %v55_v27 }
  0x32   :  { %v998_v11 = vsub.s32 %v995_v48, %v2513_v1  ;;  %v47_v12 = vand.u32 8388607, %v40_v52  ;;  %v69_v19 = vshll.u32 %v2485_v55, %v2583_v25  ;;  %v70_v21 = vshrl.u32 %v2486_v62, %v55_v27 }
  0x33   :  { %v2179_v10 = vmin.u32 %v209_v41, %v2639_v28  ;;  %v638_v13 = vadd.s32 536870912, %v637_v8  ;;  %v68_v17 = vor.u32 %v67_v9, %v66_v39  ;;  %v59_v22 = vor.u32 %v58_v57, %v57_v56 }
  0x34   :  { %v62_v23 = vor.u32 %v61_v49, %v60_v58  ;;  %v65_v24 = vor.u32 %v64_v61, %v63_v60  ;;  %v484_v26 = vadd.s32 1, %v2190_v7  ;;  %vm72_vm13 = vcmp.lt.s32.totalorder %v2658_v63, 1 }
  0x35   :  { %v211_v50 = vclz %v2179_v10  ;;  %v2668_v29 = vshrl.u32 %v638_v13, 30  ;;  %vm74_vm14 = vcmp.lt.s32.totalorder %v2658_v63, 3  ;;  %v2673_v31 = vrot.slane %v2518_v2, %v998_v11 }
  0x36   :  { %v48_v33 = vor.u32 8388608, %v47_v12  ;;  %vm75_vm15 = vcmp.lt.s32.totalorder %v2658_v63, 4  ;;  %v199_v25 = vadd.s32 %v2593_v35, %v2590_v34  ;;  %v71_v38 = vor.u32 %v70_v21, %v69_v19 }
  0x37   :  { %v2180_v30 = vadd.s32 4294967294, %v211_v50  ;;  %v640_v37 = vshll.u32 %v2668_v29, 30  ;;  %v81_v44 = vsel %vm75_vm15, %v68_v17, 920167782  ;;  %vm73_vm2 = vcmp.lt.s32.totalorder %v2658_v63, 2 }
  0x38   :  { %v80_v2 = vsel %vm72_vm13, %v59_v22, %v62_v23  ;;  %v82_v40 = vsel %vm74_vm14, %v65_v24, %v81_v44  ;;  %vm485_vm3 = vcmp.gt.s32.totalorder %v484_v26, 0  ;;  %v56_v34 = vshrl.u32 %v2481_v45, %v55_v27 }
  0x39   :  { %vm2181_vm1 = vcmp.lt.s32.totalorder %v2180_v30, 0  ;;  %v2687_v48 = vsub.s32 %v637_v8, %v640_v37  ;;  %v229_v57 = vsub.s32 4, %v2623_v32  ;;  %v77_v49 = vsel %vm75_vm15, %v65_v24, 2102212464 }
  0x3a   :  { %v214_v46 = vsel %vm2181_vm1, 0, %v2180_v30  ;;  %v83_v39 = vsel %vm73_vm2, %v80_v2, %v82_v40  ;;  %v84_v41 = vsel %vm72_vm13, %v62_v23, %v65_v24  ;;  %v85_v27 = vsel %vm75_vm15, %v71_v38, 1326507024 }
  0x3b   :  { %v215_v35 = vsub.s32 32, %v214_v46  ;;  %v216_v54 = vshll.u32 %v2639_v28, %v214_v46  ;;  %v219_v56 = vsub.s32 4294967266, %v214_v46  ;;  %v643_v58 = vsub.s32 0, %v2687_v48 }
  0x3c   :  { %v88_v28 = vshll.u32 %v48_v33, 8  ;;  %v486_v61 = vsel %vm485_vm3, %v484_v26, 0  ;;  %vm579_vm4 = vcmp.lt.s32.totalorder %v2546_v16, 0  ;;  %v76_v8 = vsel %vm72_vm13, %v56_v34, %v59_v22 }
  0x3d   :  { %v217_v59 = vshrl.u32 %v199_v25, %v215_v35  ;;  %v220_v60 = vadd.s32 127, %v219_v56  ;;  %v2195_v7 = vmin.u32 %v643_v58, %v2687_v48  ;;  %v78_v11 = vsel %vm74_vm14, %v62_v23, %v77_v49 }
  0x3e   :  { %v86_v12 = vsel %vm74_vm14, %v68_v17, %v85_v27  ;;  %v2711_v21 = vmul.u32.u64.low %v88_v28, %v83_v39  ;;  %v2712_v50 = vmul.u32.u64.high %v88_v28, %v83_v39, %v2711_v21  ;;  %vm2717_vm5 = vcmp.le.f32.partialorder %v143_v18, 0.7853982 }
  0x3f   :  { %v218_v9 = vor.u32 %v217_v59, %v216_v54  ;;  %v221_v10 = vshll.u32 %v220_v60, 23  ;;  %v645_v13 = vclz %v2195_v7  ;;  %v87_v19 = vsel %vm73_vm2, %v84_v41, %v86_v12 }
  0x40   :  { %v230_v17 = vsel %vm145_vm0, %v229_v57, %v2623_v32  ;;  %v79_v30 = vsel %vm73_vm2, %v76_v8, %v78_v11  ;;  %v2726_v33 = vmul.u32.u64.low %v88_v28, %v87_v19  ;;  %v2727_v25 = vmul.u32.u64.high %v88_v28, %v87_v19, %v2726_v33 }
  0x41   :  { %v222_v24 = vor.u32 4788187, %v221_v10  ;;  %v225_v26 = vcvt.s32.f32 %v218_v9  ;;  %v2196_v23 = vadd.s32 4294967294, %v645_v13  ;;  %v488_v38 = vand.u32 31, %v486_v61 }
  0x42   :  { %vm2731_vm6 = vcmp.le.f32.partialorder %v577_v20, 0.7853982  ;;  %v663_v44 = vsub.s32 4, %v2668_v29  ;;  %v232_v32 = vsel %vm2717_vm5, 0, %v230_v17  ;;  %v633_v63 = vadd.s32 %v2627_v36, %v2633_v43 }
  0x43   :  { %v223_v37 = vand.u32 2147483647, %v222_v24  ;;  %vm2197_vm7 = vcmp.lt.s32.totalorder %v2196_v23, 0  ;;  %v98_v2 = vadd.s32 1, %v2712_v50  ;;  %v443_v46 = vadd.s32 3, %v232_v32 }
  0x44   :  { %v648_v34 = vsel %vm2197_vm7, 0, %v2196_v23  ;;  %v95_v35 = vmul.u32 %v88_v28, %v79_v30  ;;  %v474_v57 = vand.u32 2147483647, %v2564_v42  ;;  %v2743_v49 = vshrl.u32 %v486_v61, 5 }
  0x45   :  { %v226_v40 = vmul.f32 %v225_v26, %v223_v37  ;;  %v649_v54 = vsub.s32 32, %v648_v34  ;;  %v650_v20 = vshll.u32 %v2687_v48, %v648_v34  ;;  %v653_v56 = vsub.s32 4294967266, %v648_v34 }
  0x46   :  { %v664_v36 = vsel %vm579_vm4, %v663_v44, %v2668_v29  ;;  %vm97_vm8 = vc.u32 %v2727_v25, %v2711_v21  ;;  %v2750_v43 = vand.u32 3, %v232_v32  ;;  %v2755_v60 = vand.u32 3, %v443_v46 }
  0x47   :  { %v227_v58 = vxor.u32 2147483648, %v226_v40  ;;  %v651_v39 = vshrl.u32 %v633_v63, %v649_v54  ;;  %v654_v41 = vadd.s32 127, %v653_v56  ;;  %v99_v59 = vsel %vm97_vm8, %v98_v2, %v2712_v50 }
  0x48   :  { %v100_v27 = vadd.s32 %v99_v59, %v95_v35  ;;  %v489_v28 = vsub.s32 32, %v488_v38  ;;  %v666_v8 = vsel %vm2731_vm6, 0, %v664_v36  ;;  %v491_v11 = vshll.u32 %v2481_v45, %v488_v38 }
  0x49   :  { %v228_v48 = vsel %vm145_vm0, %v227_v58, %v226_v40  ;;  %v652_v61 = vor.u32 %v651_v39, %v650_v20  ;;  %v655_v7 = vshll.u32 %v654_v41, 23  ;;  %v877_v9 = vadd.s32 3, %v666_v8 }
  0x4a   :  { %v231_v29 = vsel %vm2717_vm5, %v2544_v15, %v228_v48  ;;  %v101_v10 = vadd.s32 536870912, %v100_v27  ;;  %v494_v19 = vshll.u32 %v2482_v47, %v488_v38  ;;  %vm241_vm9 = vcmp.eq.s32.totalorder %v2750_v43, 2 }
  0x4b   :  { %2372 = vcosq.f32 %v231_v29  ;;  %v656_v12 = vor.u32 4788187, %v655_v7  ;;  %v659_v13 = vcvt.s32.f32 %v652_v61  ;;  %v492_v22 = vshrl.u32 %v2482_v47, %v489_v28 }
  0x4c   :  { %2374 = vsinq.f32 %v231_v29  ;;  %v2765_v50 = vshrl.u32 %v101_v10, 30  ;;  %v495_v24 = vshrl.u32 %v2483_v51, %v489_v28  ;;  %v497_v26 = vshll.u32 %v2483_v51, %v488_v38 }
  0x4d   :  { %vm238_vm10 = vcmp.eq.s32.totalorder %v2750_v43, 0  ;;  %v657_v17 = vand.u32 2147483647, %v656_v12  ;;  %v498_v23 = vshrl.u32 %v2484_v53, %v489_v28  ;;  %v500_v30 = vshll.u32 %v2484_v53, %v488_v38 }
  0x4e   :  { %v501_v33 = vshrl.u32 %v2485_v55, %v489_v28  ;;  %vm237_vm11 = vcmp.lt.s32.totalorder %v2750_v43, 2  ;;  %vm445_vm12 = vcmp.lt.s32.totalorder %v2755_v60, 2  ;;  %vm446_vm13 = vcmp.eq.s32.totalorder %v2755_v60, 0 }
  0x4f   :  { %v103_v47 = vshll.u32 %v2765_v50, 30  ;;  %v503_v37 = vshll.u32 %v2485_v55, %v488_v38  ;;  %v504_v51 = vshrl.u32 %v2486_v62, %v489_v28  ;;  %vm235_vm14 = vweird.f32 %v2544_v15 }
  0x50   :  { %vm449_vm15 = vcmp.eq.s32.totalorder %v2755_v60, 2  ;;  %v660_v44 = vmul.f32 %v659_v13, %v657_v17  ;;  %v2782_v53 = vand.u32 3, %v666_v8  ;;  %v481_v32 = vand.u32 8388607, %v474_v57 }
  0x51   :  { %v2786_v63 = vand.u32 3, %v877_v9  ;;  %v2788_v2 = vsub.s32 %v100_v27, %v103_v47  ;;  %v490_v40 = vshrl.u32 %v2481_v45, %v489_v28  ;;  %v493_v46 = vor.u32 %v492_v22, %v491_v11 }
  0x52   :  { %v661_v55 = vxor.u32 2147483648, %v660_v44  ;;  %v496_v38 = vor.u32 %v495_v24, %v494_v19  ;;  %v499_v62 = vor.u32 %v498_v23, %v497_v26  ;;  %v502_v34 = vor.u32 %v501_v33, %v500_v30 }
  0x53   :  { %v106_v35 = vsub.s32 0, %v2788_v2  ;;  %v505_v54 = vor.u32 %v504_v51, %v503_v37  ;;  %vm506_vm0 = vcmp.lt.s32.totalorder %v2743_v49, 1  ;;  %vm509_vm1 = vcmp.lt.s32.totalorder %v2743_v49, 4 }
  0x54   :  { %v662_v20 = vsel %vm579_vm4, %v661_v55, %v660_v44  ;;  %v482_v56 = vor.u32 8388608, %v481_v32  ;;  %vm507_vm2 = vcmp.lt.s32.totalorder %v2743_v49, 2  ;;  %vm508_vm3 = vcmp.lt.s32.totalorder %v2743_v49, 3 }
  0x55   :  { %v2373_v45 = vpop.eup %2372  ;;  %v665_v58 = vsel %vm2731_vm6, %v2546_v16, %v662_v20  ;;  %v2175_v36 = vmin.u32 %v106_v35, %v2788_v2  ;;  %v510_v39 = vsel %vm506_vm0, %v490_v40, %v493_v46  ;;  %v511_v41 = vsel %vm509_vm1, %v499_v62, 2102212464 }
  0x56   :  { %v2375_v59 = vpop.eup %2374  ;;  %v242_v48 = vxor.u32 2147483648, %v2373_v45  ;;  %2376 = vcosq.f32 %v665_v58  ;;  %v514_v27 = vsel %vm506_vm0, %v493_v46, %v496_v38  ;;  %v515_v28 = vsel %vm509_vm1, %v502_v34, 920167782 }
  0x57   :  { %v239_v29 = vxor.u32 2147483648, %v2375_v59  ;;  %2378 = vsinq.f32 %v665_v58  ;;  %v108_v18 = vclz %v2175_v36  ;;  %v519_v61 = vsel %vm509_vm1, %v505_v54, 1326507024 }
  0x58   :  { %v243_v7 = vsel %vm241_vm9, %v242_v48, %v2375_v59  ;;  %v451_v8 = vsel %vm449_vm15, %v242_v48, %v2375_v59  ;;  %v512_v9 = vsel %vm508_vm3, %v496_v38, %v511_v41  ;;  %v518_v10 = vsel %vm506_vm0, %v496_v38, %v499_v62 }
  0x59   :  { %v240_v11 = vsel %vm238_vm10, %v2373_v45, %v239_v29  ;;  %v448_v12 = vsel %vm446_vm13, %v2373_v45, %v239_v29  ;;  %vm672_vm4 = vcmp.eq.s32.totalorder %v2782_v53, 0  ;;  %v2176_v13 = vadd.s32 4294967294, %v108_v18 }
  0x5a   :  { %v516_v19 = vsel %vm508_vm3, %v499_v62, %v515_v28  ;;  %v244_v22 = vsel %vm237_vm11, %v240_v11, %v243_v7  ;;  %v452_v24 = vsel %vm445_vm12, %v448_v12, %v451_v8  ;;  %vm671_vm5 = vcmp.lt.s32.totalorder %v2782_v53, 2 }
  0x5b   :  { %v520_v26 = vsel %vm508_vm3, %v502_v34, %v519_v61  ;;  %v522_v17 = vshll.u32 %v482_v56, 8  ;;  %v245_v23 = vsel %vm235_vm14, nan, %v244_v22  ;;  %v453_v30 = vsel %vm235_vm14, nan, %v452_v24 }
  0x5c   :  { %vm669_vm6 = vweird.f32 %v2546_v16  ;;  %vm920_vm7 = vcmask 1043456   ;;  %vm2177_vm8 = vcmp.lt.s32.totalorder %v2176_v13, 0  ;;  %v521_v43 = vsel %vm507_vm2, %v518_v10, %v520_v26 }
  0x5d   :  { %vm675_vm9 = vcmp.eq.s32.totalorder %v2782_v53, 2  ;;  %vm879_vm10 = vcmp.lt.s32.totalorder %v2786_v63, 2  ;;  %v96_v60 = vadd.s32 %v2711_v21, %v2727_v25  ;;  %v517_v33 = vsel %vm507_vm2, %v514_v27, %v516_v19 }
  0x5e   :  { %vm880_vm11 = vcmp.eq.s32.totalorder %v2786_v63, 0  ;;  %v111_v15 = vsel %vm2177_vm8, 0, %v2176_v13  ;;  %v2848_v47 = vmul.u32.u64.low %v522_v17, %v521_v43  ;;  %v2849_v37 = vmul.u32.u64.high %v522_v17, %v521_v43, %v2848_v47 }
  0x5f   :  { %vm883_vm12 = vcmp.eq.s32.totalorder %v2786_v63, 2  ;;  %v895_v51 = vrot.slane %v245_v23, %v2521_v3  ;;  %v112_v44 = vsub.s32 32, %v111_v15  ;;  %v513_v32 = vsel %vm507_vm2, %v510_v39, %v512_v9 }
  0x60   :  { %v903_v40 = vrot.slane %v245_v23, %v2527_v5  ;;  %v116_v21 = vsub.s32 4294967266, %v111_v15  ;;  %v2856_v25 = vmul.u32.u64.low %v522_v17, %v517_v33  ;;  %v2857_v46 = vmul.u32.u64.high %v522_v17, %v517_v33, %v2856_v25  ;;  %v2377_v55 = vpop.eup %2376 }
  0x61   :  { %v911_v38 = vrot.slane %v245_v23, %v2524_v4  ;;  %v919_v62 = vrot.slane %v245_v23, %v2530_v6  ;;  %v113_v34 = vshll.u32 %v2788_v2, %v111_v15  ;;  %v114_v35 = vshrl.u32 %v96_v60, %v112_v44  ;;  %v2379_v54 = vpop.eup %2378 }
  0x62   :  { %v676_v20 = vxor.u32 2147483648, %v2377_v55  ;;  %v117_v56 = vadd.s32 127, %v116_v21  ;;  %v529_v49 = vmul.u32 %v522_v17, %v513_v32  ;;  %v932_v45 = vrot.slane %v453_v30, %v2521_v3 }
  0x63   :  { %v673_v58 = vxor.u32 2147483648, %v2379_v54  ;;  %vm531_vm13 = vc.u32 %v2849_v37, %v2856_v25  ;;  %v940_v36 = vrot.slane %v453_v30, %v2527_v5  ;;  %v948_v39 = vrot.slane %v453_v30, %v2524_v4 }
  0x64   :  { %v677_v41 = vsel %vm675_vm9, %v676_v20, %v2379_v54  ;;  %v885_v2 = vsel %vm883_vm12, %v676_v20, %v2379_v54  ;;  %v118_v59 = vshll.u32 %v117_v56, 23  ;;  %v532_v48 = vadd.s32 1, %v2857_v46 }
  0x65   :  { %v674_v27 = vsel %vm672_vm4, %v2377_v55, %v673_v58  ;;  %v882_v28 = vsel %vm880_vm11, %v2377_v55, %v673_v58  ;;  %v115_v29 = vor.u32 %v114_v35, %v113_v34  ;;  %v956_v18 = vrot.slane %v453_v30, %v2530_v6 }
  0x66   :  { %v678_v61 = vsel %vm671_vm5, %v674_v27, %v677_v41  ;;  %v886_v7 = vsel %vm879_vm10, %v882_v28, %v885_v2  ;;  %v119_v8 = vor.u32 4788187, %v118_v59  ;;  %v533_v9 = vsel %vm531_vm13, %v532_v48, %v2857_v46 }
  0x67   :  { %v679_v10 = vsel %vm669_vm6, nan, %v678_v61  ;;  %v887_v11 = vsel %vm669_vm6, nan, %v886_v7  ;;  %v922_v12 = vsel %vm920_vm7, %v895_v51, %v903_v40  ;;  %v534_v13 = vadd.s32 %v533_v9, %v529_v49 }
  0x68   :  { %v924_v19 = vsel %vm920_vm7, %v911_v38, %v919_v62  ;;  %v964_v22 = vrot.slane %v679_v10, 4  ;;  %v972_v53 = vrot.slane %v887_v11, 4  ;;  %v1000_v63 = vcombine.high %v2673_v31, %v2673_v31 }
  0x69   :  { %v535_v24 = vadd.s32 536870912, %v534_v13  ;;  %v958_v26 = vsel %vm920_vm7, %v932_v45, %v940_v36  ;;  %v960_v17 = vsel %vm920_vm7, %v948_v39, %v956_v18  ;;  %v2487_v23 = vmov 0.0  }
  0x6a   :  { %1218 = vmatprep.mubr.f32.mxu1 %v2487_v23  ;;  %1462 = vmatprep.mubr.f32.mxu0 %v2487_v23  ;;  %v968_v16 = vsel %vm920_vm7, %v679_v10, %v964_v22  ;;  %v976_v30 = vsel %vm920_vm7, %v887_v11, %v972_v53  ;;  %v120_v43 = vand.u32 2147483647, %v119_v8  ;;  %v122_v60 = vcvt.s32.f32 %v115_v29 }
  0x6b   :  { %v978_v33 = vmul.f32 %v968_v16, %v922_v12  ;;  %v980_v15 = vmul.f32 %v968_v16, %v924_v19  ;;  %v982_v47 = vmul.f32 %v976_v30, %v922_v12  ;;  %v984_v51 = vmul.f32 %v976_v30, %v924_v19 }
  0x6c   :  { %vm1007_vm14 = vcmask 1041408   ;;  %v2897_v44 = vshrl.u32 %v535_v24, 30  ;;  %v986_v32 = vmul.f32 %v968_v16, %v958_v26  ;;  %v988_v40 = vmul.f32 %v968_v16, %v960_v17 }
  0x6d   :  { %v1009_v21 = vrot.slane %v978_v33, 6  ;;  %v1012_v46 = vrot.slane %v980_v15, 6  ;;  %v1025_v55 = vrot.slane %v982_v47, 6  ;;  %v1028_v38 = vrot.slane %v984_v51, 6 }
  0x6e   :  { %v123_v62 = vmul.f32 %v122_v60, %v120_v43  ;;  %v537_v34 = vshll.u32 %v2897_v44, 30  ;;  %v1041_v56 = vrot.slane %v986_v32, 6  ;;  %v1044_v36 = vrot.slane %v988_v40, 6 }
  0x6f   :  { %v1013_v35 = vsel %vm1007_vm14, %v1009_v21, %v1012_v46  ;;  %v1069_v54 = vsel %vm1007_vm14, %v1000_v63, %v1009_v21  ;;  %v2903_v20 = vsel %vm1007_vm14, %v1025_v55, %v1028_v38  ;;  %v2906_v58 = vsel %vm1007_vm14, %v1012_v46, %v1025_v55 }
  0x70   :  { %v2245_v49 = vpack.c.bf16 %v1013_v35, %v1069_v54  ;;  %v538_v45 = vsub.s32 %v534_v13, %v537_v34  ;;  %vm42_vm15 = vcmp.lt.s32.totalorder %v2542_v14, 0  ;;  %v124_v39 = vxor.u32 2147483648, %v123_v62 }
  0x71   :  { %v2249_v2 = vpack.c.bf16 %v2903_v20, %v2906_v58  ;;  %v2912_v59 = vsel %vm1007_vm14, %v1041_v56, %v1044_v36  ;;  %v2915_v48 = vsel %vm1007_vm14, %v1028_v38, %v1041_v56  ;;  %v990_v27 = vmul.f32 %v976_v30, %v958_v26  ;;  %v1078_v58 = vld [vmem:[%s3296_s1] sm:$0xff] }
  0x72   :  { %2246 = vmatprep.subr.bf16.mxu1 %v2245_v49  ;;  %v540_v41 = vsub.s32 0, %v538_v45  ;;  %v992_v28 = vmul.f32 %v976_v30, %v960_v17  ;;  %v2253_v18 = vpack.c.bf16 %v2912_v59, %v2915_v48  ;;  %vm2921_vm0 = vcmp.le.f32.partialorder %v40_v52, 0.7853982  ;;  %v1080_v59 = vld [vmem:[%s3296_s1 + $0x10] sm:$0xff]  ;;  %v1081_v48 = vld [vmem:[%s3296_s1 + $0x18] sm:$0xff] }
  0x73   :  { %v1057_v61 = vrot.slane %v990_v27, 6  ;;  %v125_v9 = vsel %vm42_vm15, %v124_v39, %v123_v62  ;;  %v530_v53 = vadd.s32 %v2856_v25, %v2849_v37  ;;  %v126_v16 = vsub.s32 4, %v2765_v50 }
  0x74   :  { %v2191_v29 = vmin.u32 %v540_v41, %v538_v45  ;;  %v1060_v7 = vrot.slane %v992_v28, 6  ;;  %v128_v52 = vsel %vm2921_vm0, %v2542_v14, %v125_v9  ;;  %v560_v46 = vsub.s32 4, %v2897_v44 }
  0x75   :  { %v2931_v13 = vsel %vm1007_vm14, %v1044_v36, %v1057_v61  ;;  %2380 = vcosq.f32 %v128_v52  ;;  %v127_v15 = vsel %vm42_vm15, %v126_v16, %v2765_v50  ;;  %vm476_vm2 = vcmp.lt.s32.totalorder %v2564_v42, 0 }
  0x76   :  { %v542_v10 = vclz %v2191_v29  ;;  %v2928_v11 = vsel %vm1007_vm14, %v1057_v61, %v1060_v7  ;;  %v2934_v19 = vsel %vm1007_vm14, %v1060_v7, 1.0  ;;  %2382 = vsinq.f32 %v128_v52 }
  0x77   :  { %v2257_v22 = vpack.c.bf16 %v2928_v11, %v2931_v13  ;;  %v129_v37 = vsel %vm2921_vm0, 0, %v127_v15  ;;  %vm475_vm3 = vcmp.le.f32.partialorder %v474_v57, 0.7853982  ;;  %v561_v56 = vsel %vm476_vm2, %v560_v46, %v2897_v44  ;;  %v1083_v11 = vld [vmem:[%s3296_s1 + $0x28] sm:$0xff]  ;;  %v1084_v13 = vld [vmem:[%s3296_s1 + $0x30] sm:$0xff] }
  0x78   :  { %v2192_v12 = vadd.s32 4294967294, %v542_v10  ;;  %v339_v32 = vadd.s32 3, %v129_v37  ;;  %v133_v38 = vand.u32 3, %v129_v37  ;;  %vm132_vm11 = vweird.f32 %v2542_v14 }
  0x79   :  { %vm566_vm12 = vweird.f32 %v2564_v42 }
  0x7a   :  { %vm2193_vm1 = vcmp.lt.s32.totalorder %v2192_v12, 0  ;;  %v340_v50 = vand.u32 3, %v339_v32  ;;  %vm135_vm4 = vcmp.eq.s32.totalorder %v133_v38, 0  ;;  %vm138_vm5 = vcmp.eq.s32.totalorder %v133_v38, 2 }
  0x7b   :  { %v545_v63 = vsel %vm2193_vm1, 0, %v2192_v12  ;;  %vm134_vm9 = vcmp.lt.s32.totalorder %v133_v38, 2 }
  0x7c   :  { %v546_v24 = vsub.s32 32, %v545_v63  ;;  %v547_v26 = vshll.u32 %v538_v45, %v545_v63  ;;  %v550_v17 = vsub.s32 4294967266, %v545_v63  ;;  %vm342_vm6 = vcmp.eq.s32.totalorder %v340_v50, 0 }
  0x7d   :  { %vm345_vm8 = vcmp.eq.s32.totalorder %v340_v50, 2  ;;  %v563_v45 = vsel %vm475_vm3, 0, %v561_v56  ;;  %vm341_vm10 = vcmp.lt.s32.totalorder %v340_v50, 2 }
  0x7e   :  { %v548_v30 = vshrl.u32 %v530_v53, %v546_v24  ;;  %v551_v43 = vadd.s32 127, %v550_v17  ;;  %v773_v57 = vadd.s32 3, %v563_v45  ;;  %v567_v44 = vand.u32 3, %v563_v45 }
  0x7f   :  { %v2381_v40 = vpop.eup %2380 }
  0x80   :  { %v549_v60 = vor.u32 %v548_v30, %v547_v26  ;;  %v552_v33 = vshll.u32 %v551_v43, 23  ;;  %v2383_v55 = vpop.eup %2382  ;;  %v139_v35 = vxor.u32 2147483648, %v2381_v40  ;;  %v774_v29 = vand.u32 3, %v773_v57 }
  0x81   :  { %v136_v34 = vxor.u32 2147483648, %v2383_v55  ;;  %vm568_vm13 = vcmp.lt.s32.totalorder %v567_v44, 2  ;;  %vm569_vm15 = vcmp.eq.s32.totalorder %v567_v44, 0  ;;  %vm572_vm0 = vcmp.eq.s32.totalorder %v567_v44, 2 }
  0x82   :  { %v553_v47 = vor.u32 4788187, %v552_v33  ;;  %v556_v51 = vcvt.s32.f32 %v549_v60  ;;  %v140_v39 = vsel %vm138_vm5, %v139_v35, %v2383_v55  ;;  %v347_v27 = vsel %vm345_vm8, %v139_v35, %v2383_v55 }
  0x83   :  { %v137_v36 = vsel %vm135_vm4, %v2381_v40, %v136_v34  ;;  %v344_v41 = vsel %vm342_vm6, %v2381_v40, %v136_v34  ;;  %vm779_vm1 = vcmp.eq.s32.totalorder %v774_v29, 2  ;;  %vm1095_vm4 = vcmask 547840  }
  0x84   :  { %v554_v25 = vand.u32 2147483647, %v553_v47  ;;  %v141_v28 = vsel %vm134_vm9, %v137_v36, %v140_v39  ;;  %v348_v61 = vsel %vm341_vm10, %v344_v41, %v347_v27  ;;  %vm2157_vm5 = vcmp.lt.s32.totalorder %v16_v0, 256 }
  0x85   :  { %v142_v7 = vsel %vm132_vm11, nan, %v141_v28  ;;  %v349_v9 = vsel %vm132_vm11, nan, %v348_v61 }
  0x86   :  { %v557_v21 = vmul.f32 %v556_v51, %v554_v25  ;;  %v891_v52 = vrot.slane %v142_v7, %v2521_v3  ;;  %v899_v53 = vrot.slane %v142_v7, %v2527_v5  ;;  %v907_v63 = vrot.slane %v142_v7, %v2524_v4 }
  0x87   :  { %v915_v24 = vrot.slane %v142_v7, %v2530_v6  ;;  %v928_v16 = vrot.slane %v349_v9, %v2521_v3  ;;  %v936_v30 = vrot.slane %v349_v9, %v2527_v5  ;;  %v944_v33 = vrot.slane %v349_v9, %v2524_v4 }
  0x88   :  { %v558_v62 = vxor.u32 2147483648, %v557_v21  ;;  %v952_v15 = vrot.slane %v349_v9, %v2530_v6  ;;  %v921_v3 = vsel %vm920_vm7, %v891_v52, %v899_v53 }
  0x89   :  { %v923_v5 = vsel %vm920_vm7, %v907_v63, %v915_v24  ;;  %v957_v4 = vsel %vm920_vm7, %v928_v16, %v936_v30 }
  0x8a   :  { %v559_v54 = vsel %vm476_vm2, %v558_v62, %v557_v21  ;;  %vm775_vm2 = vcmp.lt.s32.totalorder %v774_v29, 2  ;;  %v959_v6 = vsel %vm920_vm7, %v944_v33, %v952_v15 }
  0x8b   :  { %v562_v49 = vsel %vm475_vm3, %v2564_v42, %v559_v54  ;;  %vm776_vm3 = vcmp.eq.s32.totalorder %v774_v29, 0 }
  0x8c   :  { %2384 = vcosq.f32 %v562_v49 }
  0x8d   :  { %2386 = vsinq.f32 %v562_v49 }
  0x96   :  { %v2385_v8 = vpop.eup %2384 }
  0x97   :  { %v2387_v10 = vpop.eup %2386  ;;  %v573_v12 = vxor.u32 2147483648, %v2385_v8 }
  0x98   :  { %v570_v14 = vxor.u32 2147483648, %v2387_v10 }
  0x99   :  { %v574_v26 = vsel %vm572_vm0, %v573_v12, %v2387_v10  ;;  %v781_v17 = vsel %vm779_vm1, %v573_v12, %v2387_v10 }
  0x9a   :  { %v571_v43 = vsel %vm569_vm15, %v2385_v8, %v570_v14  ;;  %v778_v60 = vsel %vm776_vm3, %v2385_v8, %v570_v14 }
  0x9b   :  { %v575_v47 = vsel %vm568_vm13, %v571_v43, %v574_v26  ;;  %v782_v51 = vsel %vm775_vm2, %v778_v60, %v781_v17 }
  0x9c   :  { %v576_v37 = vsel %vm566_vm12, nan, %v575_v47  ;;  %v783_v25 = vsel %vm566_vm12, nan, %v782_v51 }
  0x9d   :  { %v963_v32 = vrot.slane %v576_v37, 4  ;;  %v971_v40 = vrot.slane %v783_v25, 4 }
  0x9f   :  { %v967_v21 = vsel %vm920_vm7, %v576_v37, %v963_v32  ;;  %v975_v46 = vsel %vm920_vm7, %v783_v25, %v971_v40  ;;  %vm1147_vm7 = vcmask 1042432  }
  0xa0   :  { %v977_v55 = vmul.f32 %v967_v21, %v921_v3  ;;  %v979_v38 = vmul.f32 %v967_v21, %v923_v5  ;;  %v981_v62 = vmul.f32 %v975_v46, %v921_v3  ;;  %v983_v50 = vmul.f32 %v975_v46, %v923_v5 }
  0xa1   :  { %v985_v42 = vmul.f32 %v967_v21, %v957_v4  ;;  %v987_v34 = vmul.f32 %v967_v21, %v959_v6  ;;  %v989_v39 = vmul.f32 %v975_v46, %v957_v4  ;;  %v991_v57 = vmul.f32 %v975_v46, %v959_v6 }
  0xa2   :  { %v1008_v35 = vrot.slane %v977_v55, 6  ;;  %v1010_v54 = vrot.slane %v979_v38, 6  ;;  %v1024_v56 = vrot.slane %v981_v62, 6  ;;  %v1026_v49 = vrot.slane %v983_v50, 6 }
  0xa3   :  { %v1040_v45 = vrot.slane %v985_v42, 6  ;;  %v1042_v36 = vrot.slane %v987_v34, 6  ;;  %v1056_v9 = vrot.slane %v989_v39, 6  ;;  %v1058_v10 = vrot.slane %v991_v57, 6 }
  0xa4   :  { %v1011_v41 = vsel %vm1007_vm14, %v1008_v35, %v1010_v54  ;;  %v1068_v27 = vsel %vm1007_vm14, %v2673_v31, %v1008_v35  ;;  %v1027_v28 = vsel %vm1007_vm14, %v1024_v56, %v1026_v49  ;;  %v1070_v44 = vsel %vm1007_vm14, %v1010_v54, %v1024_v56 }
  0xa5   :  { %v2247_v29 = vpack.c.bf16 %v1011_v41, %v1068_v27  ;;  %v2251_v61 = vpack.c.bf16 %v1027_v28, %v1070_v44  ;;  %v1043_v7 = vsel %vm1007_vm14, %v1040_v45, %v1042_v36  ;;  %v1072_v8 = vsel %vm1007_vm14, %v1026_v49, %v1040_v45 }
  0xa6   :  { %v2255_v12 = vpack.c.bf16 %v1043_v7, %v1072_v8  ;;  %v1059_v31 = vsel %vm1007_vm14, %v1056_v9, %v1058_v10  ;;  %v1074_v52 = vsel %vm1007_vm14, %v1042_v36, %v1056_v9  ;;  %v1076_v20 = vsel %vm1007_vm14, %v1058_v10, 1.0 }
  0xa7   :  { %2248 = vmatpush1.bf16.msra.mxu1 %v2247_v29  ;;  %v2259_v14 = vpack.c.bf16 %v1059_v31, %v1074_v52  ;;  %vm1385_vm14 = vcmask 261120  }
  0xa8   :  { %2250 = vmatprep.subr.bf16.mxu1 %v2249_v2  ;;  %v1079_v2 = vld [vmem:[%s3296_s1 + $0x8] sm:$0xff] }
  0xab   :  { %2252 = vmatpush1.bf16.msra.mxu1 %v2251_v61 }
  0xac   :  { %2254 = vmatprep.subr.bf16.mxu1 %v2253_v18  ;;  %v1082_v18 = vld [vmem:[%s3296_s1 + $0x20] sm:$0xff] }
  0xaf   :  { %2256 = vmatpush1.bf16.msra.mxu1 %v2255_v12 }
  0xb0   :  { %2258 = vmatprep.subr.bf16.mxu1 %v2257_v22 }
  0xb3   :  { %2260 = vmatpush1.bf16.msra.mxu1 %v2259_v14 }
  0xb4   :  { %2206 = vmatprep.subr.msk.mxu1 %vm1147_vm7, %v2934_v19  ;;  %v1085_v19 = vld [vmem:[%s3296_s1 + $0x38] sm:$0xff] }
  0xb7   :  { %2207 = vmatpush1.msk.msra.mxu1 %vm1147_vm7, %v1076_v20  ;;  %v1321_v20 = vld [vmem:[%s3297_s2] sm:$0xff] }
  0xb8   :  { %2208 = vmatmul.mubr.msk.f32.vlgmr.msra.gmra.mrb[0].mxu1 %vm1095_vm4, %v1078_v58  ;;  %v1322_v58 = vld [vmem:[%s3297_s2 + $0x8] sm:$0xff] }
  0xb9   :  { %1224 = vmatprep.mubr.f32.mxu1 %v2487_v23 }
  0xbc   :  { %2209 = vmatmul.mubr.msk.f32.gmra.mrb[2].mxu1 %vm1095_vm4, %v1079_v2  ;;  %v1323_v2 = vld [vmem:[%s3297_s2 + $0x10] sm:$0xff] }
  0xbd   :  { %1230 = vmatprep.mubr.f32.mxu1 %v2487_v23 }
  0xc0   :  { %2210 = vmatmul.mubr.msk.f32.gmra.mrb[4].mxu1 %vm1095_vm4, %v1080_v59  ;;  %v1324_v59 = vld [vmem:[%s3297_s2 + $0x18] sm:$0xff] }
  0xc1   :  { %1236 = vmatprep.mubr.f32.mxu1 %v2487_v23 }
  0xc4   :  { %2211 = vmatmul.mubr.msk.f32.gmra.mrb[6].mxu1 %vm1095_vm4, %v1081_v48 }
  0xc5   :  { %1242 = vmatprep.mubr.f32.mxu1 %v2487_v23 }
  0xc8   :  { %2212 = vmatmul.mubr.msk.f32.gmra.mrb[8].mxu1 %vm1095_vm4, %v1082_v18 }
  0xc9   :  { %1248 = vmatprep.mubr.f32.mxu1 %v2487_v23 }
  0xcc   :  { %2213 = vmatmul.mubr.msk.f32.gmra.mrb[10].mxu1 %vm1095_vm4, %v1083_v11 }
  0xcd   :  { %1254 = vmatprep.mubr.f32.mxu1 %v2487_v23 }
  0xd0   :  { %2214 = vmatmul.mubr.msk.f32.gmra.mrb[12].mxu1 %vm1095_vm4, %v1084_v13 }
  0xd1   :  { %1260 = vmatprep.mubr.f32.mxu1 %v2487_v23 }
  0xd4   :  { %2215 = vmatmul.mubr.msk.f32.gmra.mrb[14].mxu1 %vm1095_vm4, %v1085_v19 }
  0xd5   :  { %1266 = vmatprep.mubr.f32.mxu1 %v2487_v23 }
 0x18b   :  { %v1220_v22 = vpop.f32.mrb[0].mxu1 }
 0x18c   :  { %v1353_v53 = vmul.f32 0.70710677, %v1220_v22  ;;  %v1222_v63 = vpop.f32.mrb[1].mxu1  ;;  %v1345_v21 = vmul.f32 0.5, %v1220_v22 }
 0x18d   :  { %v1354_v24 = vmul.f32 0.70710677, %v1222_v63  ;;  %v1346_v38 = vmul.f32 0.5, %v1222_v63 }
 0x18e   :  { %2388 = verf.f32 %v1353_v53 }
 0x18f   :  { %2390 = verf.f32 %v1354_v24  ;;  %v1226_v26 = vpop.f32.mrb[2].mxu1  ;;  %v1086_v24 = vld [vmem:[%s3296_s1 + $0x40] sm:$0xff] }
 0x190   :  { %v1355_v17 = vmul.f32 0.70710677, %v1226_v26  ;;  %v1228_v16 = vpop.f32.mrb[3].mxu1  ;;  %v1347_v46 = vmul.f32 0.5, %v1226_v26  ;;  %2216 = vmatmul.mubr.msk.f32.gmra.mrb[16].mxu1 %vm1095_vm4, %v1086_v24  ;;  %v1087_v26 = vld [vmem:[%s3296_s1 + $0x48] sm:$0xff] }
 0x191   :  { %v1356_v30 = vmul.f32 0.70710677, %v1228_v16  ;;  %v1348_v62 = vmul.f32 0.5, %v1228_v16  ;;  %1272 = vmatprep.mubr.f32.mxu1 %v2487_v23  ;;  %v1089_v16 = vld [vmem:[%s3296_s1 + $0x58] sm:$0xff] }
 0x192   :  { %2392 = verf.f32 %v1355_v17  ;;  %v1088_v17 = vld [vmem:[%s3296_s1 + $0x50] sm:$0xff] }
 0x193   :  { %2394 = verf.f32 %v1356_v30  ;;  %v1232_v43 = vpop.f32.mrb[4].mxu1  ;;  %v3093_v30 = vld [vmem:[%s3297_s2 + $0xa0] sm:$0xff] }
 0x194   :  { %v1357_v60 = vmul.f32 0.70710677, %v1232_v43  ;;  %v1234_v33 = vpop.f32.mrb[5].mxu1  ;;  %v1349_v28 = vmul.f32 0.5, %v1232_v43  ;;  %2217 = vmatmul.mubr.msk.f32.gmra.mrb[18].mxu1 %vm1095_vm4, %v1087_v26  ;;  %v2488_v43 = vmov 1  }
 0x195   :  { %v1358_v15 = vmul.f32 0.70710677, %v1234_v33  ;;  %v1350_v61 = vmul.f32 0.5, %v1234_v33  ;;  %1278 = vmatprep.mubr.f32.mxu1 %v2487_v23  ;;  %2370 = vset.pattern.permute.xlu1 %v2488_v43  ;;  %v3106_v33 = vld [vmem:[%s3297_s2 + $0xb0] sm:$0xff] }
 0x196   :  { %2396 = verf.f32 %v1357_v60  ;;  %2080 = vperm.xlu1 %2370, %v3093_v30   ;;  %v3100_v60 = vld [vmem:[%s3297_s2 + $0xa8] sm:$0xff] }
 0x197   :  { %2398 = verf.f32 %v1358_v15  ;;  %v1238_v47 = vpop.f32.mrb[6].mxu1  ;;  %v3112_v15 = vld [vmem:[%s3297_s2 + $0xb8] sm:$0xff] }
 0x198   :  { %v2389_v51 = vpop.eup %2388  ;;  %v1359_v37 = vmul.f32 0.70710677, %v1238_v47  ;;  %v1240_v25 = vpop.f32.mrb[7].mxu1  ;;  %v1351_v44 = vmul.f32 0.5, %v1238_v47  ;;  %2218 = vmatmul.mubr.msk.f32.gmra.mrb[20].mxu1 %vm1095_vm4, %v1088_v17 }
 0x199   :  { %v2391_v3 = vpop.eup %2390  ;;  %v1360_v5 = vmul.f32 0.70710677, %v1240_v25  ;;  %v1369_v32 = vadd.f32 1.0, %v2389_v51  ;;  %v1352_v7 = vmul.f32 0.5, %v1240_v25  ;;  %1284 = vmatprep.mubr.f32.mxu1 %v2487_v23 }
 0x19a   :  { %2400 = verf.f32 %v1359_v37  ;;  %v1370_v4 = vadd.f32 1.0, %v2391_v3  ;;  %2084 = vperm.xlu1 %2370, %v3100_v60  }
 0x19b   :  { %2402 = verf.f32 %v1360_v5  ;;  %v1377_v42 = vmul.f32 %v1369_v32, %v1345_v21  ;;  %v1244_v48 = vpop.f32.mrb[8].mxu1 }
 0x19c   :  { %v2393_v40 = vpop.eup %2392  ;;  %v1378_v54 = vmul.f32 %v1370_v4, %v1346_v38  ;;  %v1246_v18 = vpop.f32.mrb[9].mxu1  ;;  %2219 = vmatmul.mubr.msk.f32.gmra.mrb[22].mxu1 %vm1095_vm4, %v1089_v16 }
 0x19d   :  { %v2395_v6 = vpop.eup %2394  ;;  %v1371_v55 = vadd.f32 1.0, %v2393_v40  ;;  %1290 = vmatprep.mubr.f32.mxu1 %v2487_v23 }
 0x19e   :  { %v1372_v50 = vadd.f32 1.0, %v2395_v6  ;;  %2088 = vperm.xlu1 %2370, %v3106_v33  }
 0x19f   :  { %v1379_v34 = vmul.f32 %v1371_v55, %v1347_v46  ;;  %v1250_v11 = vpop.f32.mrb[10].mxu1 }
 0x1a0   :  { %v2397_v35 = vpop.eup %2396  ;;  %v1380_v56 = vmul.f32 %v1372_v50, %v1348_v62  ;;  %v1252_v13 = vpop.f32.mrb[11].mxu1 }
 0x1a1   :  { %v2399_v49 = vpop.eup %2398  ;;  %v3038_v45 = vpack.c.bf16 %v1379_v34, %v1377_v42  ;;  %v1373_v39 = vadd.f32 1.0, %v2397_v35 }
 0x1a2   :  { %v3040_v36 = vpack.c.bf16 %v1380_v56, %v1378_v54  ;;  %v1374_v41 = vadd.f32 1.0, %v2399_v49  ;;  %2092 = vperm.xlu1 %2370, %v3112_v15  }
 0x1a3   :  { %v1381_v9 = vmul.f32 %v1373_v39, %v1349_v28  ;;  %v1256_v19 = vpop.f32.mrb[12].mxu1 }
 0x1a4   :  { %v2401_v57 = vpop.eup %2400  ;;  %2262 = vmatprep.subr.bf16.mxu0 %v3040_v36  ;;  %v1382_v12 = vmul.f32 %v1374_v41, %v1350_v61  ;;  %v1258_v22 = vpop.f32.mrb[13].mxu1 }
 0x1a5   :  { %v2403_v27 = vpop.eup %2402  ;;  %v1375_v29 = vadd.f32 1.0, %v2401_v57  ;;  %2264 = vmatpush1.bf16.msra.mxu0 %v3038_v45 }
 0x1a6   :  { %v1376_v8 = vadd.f32 1.0, %v2403_v27 }
 0x1a7   :  { %v1383_v10 = vmul.f32 %v1375_v29, %v1351_v44  ;;  %v1262_v53 = vpop.f32.mrb[14].mxu1 }
 0x1a8   :  { %v1384_v31 = vmul.f32 %v1376_v8, %v1352_v7  ;;  %v1264_v63 = vpop.f32.mrb[15].mxu1 }
 0x1a9   :  { %v3044_v52 = vpack.c.bf16 %v1383_v10, %v1381_v9 }
 0x1aa   :  { %v3046_v14 = vpack.c.bf16 %v1384_v31, %v1382_v12 }
 0x1ac   :  { %2266 = vmatprep.subr.bf16.mxu0 %v3046_v14 }
 0x1ad   :  { %2268 = vmatpush1.bf16.msra.mxu0 %v3044_v52 }
 0x1b0   :  { %2225 = vmatmul.mubr.msk.f32.vlgmr.msra.gmra.mrb[0].mxu0 %vm1385_vm14, %v1321_v20 }
 0x1b1   :  { %1468 = vmatprep.mubr.f32.mxu0 %v2487_v23 }
 0x1b4   :  { %2226 = vmatmul.mubr.msk.f32.gmra.mrb[2].mxu0 %vm1385_vm14, %v1322_v58 }
 0x1b5   :  { %1474 = vmatprep.mubr.f32.mxu0 %v2487_v23 }
 0x1b8   :  { %2227 = vmatmul.mubr.msk.f32.gmra.mrb[4].mxu0 %vm1385_vm14, %v1323_v2 }
 0x1b9   :  { %1480 = vmatprep.mubr.f32.mxu0 %v2487_v23 }
 0x1bc   :  { %2228 = vmatmul.mubr.msk.f32.gmra.mrb[6].mxu0 %vm1385_vm14, %v1324_v59 }
 0x1bd   :  { %1611 = vmatprep.mubr.f32.mxu0 %v2487_v23 }
 0x283   :  { %v1464_v47 = vpop.f32.mrb[0].mxu0 }
 0x284   :  { %v1487_v51 = vadd.f32 %v1464_v47, %v1244_v48  ;;  %v1466_v37 = vpop.f32.mrb[1].mxu0 }
 0x285   :  { %v1488_v25 = vadd.f32 %v1466_v37, %v1246_v18 }
 0x286   :  { %v1503_v3 = vmul.f32 0.70710677, %v1487_v51  ;;  %v1495_v7 = vmul.f32 0.5, %v1487_v51 }
 0x287   :  { %v1504_v5 = vmul.f32 0.70710677, %v1488_v25  ;;  %v1470_v32 = vpop.f32.mrb[2].mxu0  ;;  %v1496_v10 = vmul.f32 0.5, %v1488_v25 }
 0x288   :  { %2404 = verf.f32 %v1503_v3  ;;  %v1489_v40 = vadd.f32 %v1470_v32, %v1250_v11  ;;  %v1472_v4 = vpop.f32.mrb[3].mxu0 }
 0x289   :  { %2406 = verf.f32 %v1504_v5  ;;  %v1490_v6 = vadd.f32 %v1472_v4, %v1252_v13  ;;  %v1325_v4 = vld [vmem:[%s3297_s2 + $0x20] sm:$0xff] }
 0x28a   :  { %v1505_v21 = vmul.f32 0.70710677, %v1489_v40  ;;  %v1497_v8 = vmul.f32 0.5, %v1489_v40 }
 0x28b   :  { %v1506_v46 = vmul.f32 0.70710677, %v1490_v6  ;;  %v1476_v55 = vpop.f32.mrb[4].mxu0  ;;  %v1498_v12 = vmul.f32 0.5, %v1490_v6  ;;  %v1326_v6 = vld [vmem:[%s3297_s2 + $0x28] sm:$0xff] }
 0x28c   :  { %2408 = verf.f32 %v1505_v21  ;;  %v1491_v38 = vadd.f32 %v1476_v55, %v1256_v19  ;;  %v1478_v62 = vpop.f32.mrb[5].mxu0  ;;  %v1331_v21 = vld [vmem:[%s3297_s2 + $0x50] sm:$0xff]  ;;  %v1268_v55 = vpop.f32.mrb[16].mxu1 }
 0x28d   :  { %2410 = verf.f32 %v1506_v46  ;;  %v1492_v50 = vadd.f32 %v1478_v62, %v1258_v22  ;;  %v1332_v46 = vld [vmem:[%s3297_s2 + $0x58] sm:$0xff] }
 0x28e   :  { %v1507_v42 = vmul.f32 0.70710677, %v1491_v38  ;;  %v1499_v24 = vmul.f32 0.5, %v1491_v38  ;;  %v1270_v38 = vpop.f32.mrb[17].mxu1 }
 0x28f   :  { %v1508_v34 = vmul.f32 0.70710677, %v1492_v50  ;;  %v1482_v35 = vpop.f32.mrb[6].mxu0  ;;  %v1500_v16 = vmul.f32 0.5, %v1492_v50  ;;  %v1274_v62 = vpop.f32.mrb[18].mxu1 }
 0x290   :  { %2412 = verf.f32 %v1507_v42  ;;  %v1493_v54 = vadd.f32 %v1482_v35, %v1262_v53  ;;  %v1484_v56 = vpop.f32.mrb[7].mxu0  ;;  %v1276_v50 = vpop.f32.mrb[19].mxu1 }
 0x291   :  { %2414 = verf.f32 %v1508_v34  ;;  %v1494_v49 = vadd.f32 %v1484_v56, %v1264_v63  ;;  %v1280_v42 = vpop.f32.mrb[20].mxu1  ;;  %v1090_v56 = vld [vmem:[%s3296_s1 + $0x60] sm:$0xff] }
 0x292   :  { %v2405_v39 = vpop.eup %2404  ;;  %v1509_v57 = vmul.f32 0.70710677, %v1493_v54  ;;  %v1501_v26 = vmul.f32 0.5, %v1493_v54  ;;  %v1282_v34 = vpop.f32.mrb[21].mxu1  ;;  %2220 = vmatmul.mubr.msk.f32.gmra.mrb[24].mxu1 %vm1095_vm4, %v1090_v56 }
 0x293   :  { %v2407_v41 = vpop.eup %2406  ;;  %v1510_v27 = vmul.f32 0.70710677, %v1494_v49  ;;  %v1519_v28 = vadd.f32 1.0, %v2405_v39  ;;  %v1502_v47 = vmul.f32 0.5, %v1494_v49  ;;  %v1286_v35 = vpop.f32.mrb[22].mxu1  ;;  %1296 = vmatprep.mubr.f32.mxu1 %v2487_v23  ;;  %v1091_v49 = vld [vmem:[%s3296_s1 + $0x68] sm:$0xff] }
 0x294   :  { %2416 = verf.f32 %v1509_v57  ;;  %v1520_v29 = vadd.f32 1.0, %v2407_v41  ;;  %v1288_v54 = vpop.f32.mrb[23].mxu1  ;;  %v1092_v39 = vld [vmem:[%s3296_s1 + $0x70] sm:$0xff]  ;;  %v1093_v57 = vld [vmem:[%s3296_s1 + $0x78] sm:$0xff]  ;;  %v1094_v41 = vld [vmem:[%s3296_s1 + $0x80] sm:$0x1] }
 0x295   :  { %2418 = verf.f32 %v1510_v27  ;;  %v1527_v20 = vmul.f32 %v1519_v28, %v1495_v7  ;;  %v2489_v27 = vmov 0  }
 0x296   :  { %v2409_v44 = vpop.eup %2408  ;;  %v1528_v59 = vmul.f32 %v1520_v29, %v1496_v10  ;;  %2221 = vmatmul.mubr.msk.f32.gmra.mrb[26].mxu1 %vm1095_vm4, %v1091_v49  ;;  %2369 = vset.pattern.permute.xlu0 %v2489_v27 }
 0x297   :  { %v2411_v61 = vpop.eup %2410  ;;  %v1521_v9 = vadd.f32 1.0, %v2409_v44  ;;  %1302 = vmatprep.mubr.f32.mxu1 %v2487_v23  ;;  %2053 = vperm.xlu0 %2369, %v3093_v30  }
 0x298   :  { %v1522_v31 = vadd.f32 1.0, %v2411_v61 }
 0x299   :  { %v1529_v58 = vmul.f32 %v1521_v9, %v1497_v8 }
 0x29a   :  { %v2413_v2 = vpop.eup %2412  ;;  %v1530_v48 = vmul.f32 %v1522_v31, %v1498_v12  ;;  %2222 = vmatmul.mubr.msk.f32.gmra.mrb[28].mxu1 %vm1095_vm4, %v1092_v39 }
 0x29b   :  { %v2415_v18 = vpop.eup %2414  ;;  %v3115_v11 = vpack.c.bf16 %v1529_v58, %v1527_v20  ;;  %v1523_v19 = vadd.f32 1.0, %v2413_v2  ;;  %1308 = vmatprep.mubr.f32.mxu1 %v2487_v23  ;;  %2058 = vperm.xlu0 %2369, %v3100_v60  }
 0x29c   :  { %v3117_v13 = vpack.c.bf16 %v1530_v48, %v1528_v59  ;;  %v1524_v53 = vadd.f32 1.0, %v2415_v18 }
 0x29d   :  { %v1531_v37 = vmul.f32 %v1523_v19, %v1499_v24 }
 0x29e   :  { %v2417_v22 = vpop.eup %2416  ;;  %2270 = vmatprep.subr.bf16.mxu0 %v3117_v13  ;;  %v1532_v3 = vmul.f32 %v1524_v53, %v1500_v16  ;;  %2223 = vmatmul.mubr.msk.f32.gmra.mrb[30].mxu1 %vm1095_vm4, %v1093_v57 }
 0x29f   :  { %v2419_v63 = vpop.eup %2418  ;;  %v1525_v17 = vadd.f32 1.0, %v2417_v22  ;;  %2272 = vmatpush1.bf16.msra.mxu0 %v3115_v11  ;;  %1314 = vmatprep.mubr.f32.mxu1 %v2487_v23 }
 0x2a0   :  { %v1526_v51 = vadd.f32 1.0, %v2419_v63  ;;  %2063 = vperm.xlu0 %2369, %v3106_v33  }
 0x2a1   :  { %v1533_v25 = vmul.f32 %v1525_v17, %v1501_v26 }
 0x2a2   :  { %v1534_v5 = vmul.f32 %v1526_v51, %v1502_v47  ;;  %2224 = vmatmul.mubr.msk.f32.gmra.mrb[32].mxu1 %vm1095_vm4, %v1094_v41 }
 0x2a3   :  { %v3121_v32 = vpack.c.bf16 %v1533_v25, %v1531_v37 }
 0x2a4   :  { %v3123_v40 = vpack.c.bf16 %v1534_v5, %v1532_v3  ;;  %2068 = vperm.xlu0 %2369, %v3112_v15  }
 0x2a6   :  { %2274 = vmatprep.subr.bf16.mxu0 %v3123_v40 }
 0x2a7   :  { %2276 = vmatpush1.bf16.msra.mxu0 %v3121_v32 }
 0x2a8   :  { %2278 = vmatprep.subr.bf16.mxu0 %v3040_v36  ;;  %v1327_v36 = vld [vmem:[%s3297_s2 + $0x30] sm:$0xff]  ;;  %2371 = vset.pattern.permute.xlu0 %v2488_v43 }
 0x2aa   :  { %2229 = vmatmul.mubr.msk.f32.vlgmr.msra.gmra.mrb[8].mxu0 %vm1385_vm14, %v1325_v4 }
 0x2ab   :  { %2280 = vmatpush1.bf16.msra.mxu0 %v3038_v45  ;;  %1617 = vmatprep.mubr.f32.mxu0 %v2487_v23  ;;  %v1328_v45 = vld [vmem:[%s3297_s2 + $0x38] sm:$0xff] }
 0x2ac   :  { %2282 = vmatprep.subr.bf16.mxu0 %v3046_v14  ;;  %v1330_v14 = vld [vmem:[%s3297_s2 + $0x48] sm:$0xff] }
 0x2ae   :  { %2230 = vmatmul.mubr.msk.f32.gmra.mrb[10].mxu0 %vm1385_vm14, %v1326_v6 }
 0x2af   :  { %2284 = vmatpush1.bf16.msra.mxu0 %v3044_v52  ;;  %1623 = vmatprep.mubr.f32.mxu0 %v2487_v23  ;;  %v1329_v52 = vld [vmem:[%s3297_s2 + $0x40] sm:$0xff] }
 0x2b2   :  { %2231 = vmatmul.mubr.msk.f32.gmra.mrb[12].mxu0 %vm1385_vm14, %v1327_v36 }
 0x2b3   :  { %1629 = vmatprep.mubr.f32.mxu0 %v2487_v23 }
 0x2b6   :  { %2232 = vmatmul.mubr.msk.f32.gmra.mrb[14].mxu0 %vm1385_vm14, %v1328_v45 }
 0x2b7   :  { %1720 = vmatprep.mubr.f32.mxu0 %v2487_v23 }
 0x2ba   :  { %2233 = vmatmul.mubr.msk.f32.vlgmr.msra.gmra.mrb[8].mxu0 %vm1385_vm14, %v1329_v52 }
 0x2bb   :  { %1726 = vmatprep.mubr.f32.mxu0 %v2487_v23 }
 0x2be   :  { %2234 = vmatmul.mubr.msk.f32.gmra.mrb[10].mxu0 %vm1385_vm14, %v1330_v14 }
 0x2bf   :  { %1732 = vmatprep.mubr.f32.mxu0 %v2487_v23 }
 0x2c2   :  { %2235 = vmatmul.mubr.msk.f32.gmra.mrb[12].mxu0 %vm1385_vm14, %v1331_v21 }
 0x2c3   :  { %1738 = vmatprep.mubr.f32.mxu0 %v2487_v23 }
 0x2c6   :  { %2236 = vmatmul.mubr.msk.f32.gmra.mrb[14].mxu0 %vm1385_vm14, %v1332_v46 }
 0x2c7   :  { %1869 = vmatprep.mubr.f32.mxu0 %v2487_v23 }
 0x38d   :  { %v1722_v28 = vpop.f32.mrb[8].mxu0 }
 0x38e   :  { %v2309_v44 = vadd.f32 %v1722_v28, %v1268_v55  ;;  %v1724_v29 = vpop.f32.mrb[9].mxu0 }
 0x38f   :  { %v2310_v61 = vadd.f32 %v1724_v29, %v1270_v38 }
 0x390   :  { %v1761_v7 = vmul.f32 0.70710677, %v2309_v44  ;;  %v1753_v51 = vmul.f32 0.5, %v2309_v44 }
 0x391   :  { %v1762_v8 = vmul.f32 0.70710677, %v2310_v61  ;;  %v1728_v9 = vpop.f32.mrb[10].mxu0  ;;  %v1754_v3 = vmul.f32 0.5, %v2310_v61  ;;  %v1333_v61 = vld [vmem:[%s3297_s2 + $0x60] sm:$0xff] }
 0x392   :  { %2420 = verf.f32 %v1761_v7  ;;  %v2311_v10 = vadd.f32 %v1728_v9, %v1274_v62  ;;  %v1730_v12 = vpop.f32.mrb[11].mxu0  ;;  %v1334_v7 = vld [vmem:[%s3297_s2 + $0x68] sm:$0xff]  ;;  %v1340_v9 = vld [vmem:[%s3297_s2 + $0x98] sm:$0xff] }
 0x393   :  { %2422 = verf.f32 %v1762_v8  ;;  %v2312_v30 = vadd.f32 %v1730_v12, %v1276_v50  ;;  %v1339_v8 = vld [vmem:[%s3297_s2 + $0x90] sm:$0xff] }
 0x394   :  { %v1763_v31 = vmul.f32 0.70710677, %v2311_v10  ;;  %v1755_v37 = vmul.f32 0.5, %v2311_v10  ;;  %v1292_v10 = vpop.f32.mrb[24].mxu1 }
 0x395   :  { %v1764_v60 = vmul.f32 0.70710677, %v2312_v30  ;;  %v1734_v20 = vpop.f32.mrb[12].mxu0  ;;  %v1756_v5 = vmul.f32 0.5, %v2312_v30  ;;  %v1294_v12 = vpop.f32.mrb[25].mxu1 }
 0x396   :  { %2424 = verf.f32 %v1763_v31  ;;  %v2313_v33 = vadd.f32 %v1734_v20, %v1280_v42  ;;  %v1736_v15 = vpop.f32.mrb[13].mxu0  ;;  %v1298_v30 = vpop.f32.mrb[26].mxu1 }
 0x397   :  { %2426 = verf.f32 %v1764_v60  ;;  %v2314_v43 = vadd.f32 %v1736_v15, %v1282_v34  ;;  %v1300_v31 = vpop.f32.mrb[27].mxu1 }
 0x398   :  { %v1765_v58 = vmul.f32 0.70710677, %v2313_v33  ;;  %v1757_v34 = vmul.f32 0.5, %v2313_v33  ;;  %v1304_v60 = vpop.f32.mrb[28].mxu1 }
 0x399   :  { %v1766_v2 = vmul.f32 0.70710677, %v2314_v43  ;;  %v1740_v59 = vpop.f32.mrb[14].mxu0  ;;  %v1758_v56 = vmul.f32 0.5, %v2314_v43  ;;  %v1306_v20 = vpop.f32.mrb[29].mxu1 }
 0x39a   :  { %2428 = verf.f32 %v1765_v58  ;;  %v2315_v48 = vadd.f32 %v1740_v59, %v1286_v35  ;;  %v1742_v18 = vpop.f32.mrb[15].mxu0  ;;  %v1310_v33 = vpop.f32.mrb[30].mxu1 }
 0x39b   :  { %2430 = verf.f32 %v1766_v2  ;;  %v2316_v19 = vadd.f32 %v1742_v18, %v1288_v54  ;;  %v1312_v15 = vpop.f32.mrb[31].mxu1 }
 0x39c   :  { %v2421_v22 = vpop.eup %2420  ;;  %v1767_v53 = vmul.f32 0.70710677, %v2315_v48  ;;  %v1759_v35 = vmul.f32 0.5, %v2315_v48  ;;  %v3267_v43 = vpop.f32.mrb[32].mxu1 }
 0x39d   :  { %v2423_v63 = vpop.eup %2422  ;;  %v1768_v24 = vmul.f32 0.70710677, %v2316_v19  ;;  %v1777_v26 = vadd.f32 1.0, %v2421_v22  ;;  %v1760_v49 = vmul.f32 0.5, %v2316_v19  ;;  %v3269_v58 = vpop.f32.mrb[33].mxu1 }
 0x39e   :  { %2432 = verf.f32 %v1767_v53  ;;  %v1778_v16 = vadd.f32 1.0, %v2423_v63 }
 0x39f   :  { %2434 = verf.f32 %v1768_v24  ;;  %v3200_v6 = vmul.f32 %v1777_v26, %v1753_v51 }
 0x3a0   :  { %v2425_v17 = vpop.eup %2424  ;;  %v3204_v52 = vmul.f32 %v1778_v16, %v1754_v3 }
 0x3a1   :  { %v2427_v47 = vpop.eup %2426  ;;  %v1779_v25 = vadd.f32 1.0, %v2425_v17 }
 0x3a2   :  { %v1780_v4 = vadd.f32 1.0, %v2427_v47 }
 0x3a3   :  { %v3202_v36 = vmul.f32 %v1779_v25, %v1755_v37  ;;  %v2081_v25 = vpop.permute.xlu1 %2080 }
 0x3a4   :  { %v2429_v45 = vpop.eup %2428  ;;  %v3206_v14 = vmul.f32 %v1780_v4, %v1756_v5 }
 0x3a5   :  { %v2431_v21 = vpop.eup %2430  ;;  %v2287_v46 = vpack.c.bf16 %v3202_v36, %v3200_v6  ;;  %v1781_v38 = vadd.f32 1.0, %v2429_v45 }
 0x3a6   :  { %v2285_v55 = vpack.c.bf16 %v3206_v14, %v3204_v52  ;;  %v1782_v50 = vadd.f32 1.0, %v2431_v21  ;;  %v2054_v21 = vpop.permute.xlu0 %2053 }
 0x3a7   :  { %v3212_v57 = vmul.f32 %v1781_v38, %v1757_v34 }
 0x3a8   :  { %v2433_v62 = vpop.eup %2432  ;;  %2286 = vmatprep.subr.bf16.mxu0 %v2285_v55  ;;  %v3216_v27 = vmul.f32 %v1782_v50, %v1758_v56 }
 0x3a9   :  { %v2435_v42 = vpop.eup %2434  ;;  %2288 = vmatpush1.bf16.msra.mxu0 %v2287_v46  ;;  %v1783_v54 = vadd.f32 1.0, %v2433_v62 }
 0x3aa   :  { %v1784_v39 = vadd.f32 1.0, %v2435_v42 }
 0x3ab   :  { %v3214_v41 = vmul.f32 %v1783_v54, %v1759_v35  ;;  %v2085_v54 = vpop.permute.xlu1 %2084 }
 0x3ac   :  { %v3218_v28 = vmul.f32 %v1784_v39, %v1760_v49 }
 0x3ad   :  { %v2291_v44 = vpack.c.bf16 %v3214_v41, %v3212_v57 }
 0x3ae   :  { %v2289_v29 = vpack.c.bf16 %v3218_v28, %v3216_v27 }
 0x3b0   :  { %2290 = vmatprep.subr.bf16.mxu0 %v2289_v29 }
 0x3b1   :  { %2292 = vmatpush1.bf16.msra.mxu0 %v2291_v44 }
 0x3b2   :  { %2294 = vmatprep.subr.bf16.mxu0 %v3117_v13  ;;  %v1335_v13 = vld [vmem:[%s3297_s2 + $0x70] sm:$0xff] }
 0x3b4   :  { %2237 = vmatmul.mubr.msk.f32.vlgmr.msra.gmra.mrb[16].mxu0 %vm1385_vm14, %v1333_v61  ;;  %v2059_v61 = vpop.permute.xlu0 %2058 }
 0x3b5   :  { %2296 = vmatpush1.bf16.msra.mxu0 %v3115_v11  ;;  %1875 = vmatprep.mubr.f32.mxu0 %v2487_v23  ;;  %v1336_v11 = vld [vmem:[%s3297_s2 + $0x78] sm:$0xff] }
 0x3b6   :  { %2298 = vmatprep.subr.bf16.mxu0 %v3123_v40  ;;  %v1338_v40 = vld [vmem:[%s3297_s2 + $0x88] sm:$0xff] }
 0x3b8   :  { %2238 = vmatmul.mubr.msk.f32.gmra.mrb[18].mxu0 %vm1385_vm14, %v1334_v7 }
 0x3b9   :  { %2300 = vmatpush1.bf16.msra.mxu0 %v3121_v32  ;;  %1881 = vmatprep.mubr.f32.mxu0 %v2487_v23  ;;  %v1337_v32 = vld [vmem:[%s3297_s2 + $0x80] sm:$0xff]  ;;  %s2491_s2 = smov [#allocation2]  }
 0x3ba   :  { %s2166_s11 = sshll.u32 %s2491_s2, 4  ;;  %s2167_s11 = int_to_ptr.vmem [resolvable:$true] %s2166_s11 }
 0x3bb   :  { %s2456_s12 = scalar_lea.vmem %s2167_s11, 32  ;;  %p2461_p1 = scmp.lt.s32.totalorder %s2167_s11, %s2167_s11 }
 0x3bc   :  { %2239 = vmatmul.mubr.msk.f32.gmra.mrb[20].mxu0 %vm1385_vm14, %v1335_v13  ;;  %v2095_v13 = vmul.f32 %v2081_v25, %v3200_v6  ;;  %p2457_p0 = scmp.ne.s32.totalorder %s2167_s11, %s2456_s12  ;;  %p2462_p2 = scmp.lt.s32.totalorder %s2456_s12, %s2456_s12 }
 0x3bd   :  { %1887 = vmatprep.mubr.f32.mxu0 %v2487_v23 }
 0x3be   :  { %p2463_p3 = por %p2462_p2, %p2461_p1 }
 0x3c0   :  { %2240 = vmatmul.mubr.msk.f32.gmra.mrb[22].mxu0 %vm1385_vm14, %v1336_v11  ;;  %p2464_p4 = pnand %p2463_p3, %p2457_p0 }
 0x3c1   :  { %1978 = vmatprep.mubr.f32.mxu0 %v2487_v23 }
 0x3c4   :  { %2241 = vmatmul.mubr.msk.f32.vlgmr.msra.gmra.mrb[16].mxu0 %vm1385_vm14, %v1337_v32 }
 0x3c5   :  { %1984 = vmatprep.mubr.f32.mxu0 %v2487_v23 }
 0x3c8   :  { %2242 = vmatmul.mubr.msk.f32.gmra.mrb[18].mxu0 %vm1385_vm14, %v1338_v40 }
 0x3c9   :  { %1990 = vmatprep.mubr.f32.mxu0 %v2487_v23 }
 0x3cc   :  { %2243 = vmatmul.mubr.msk.f32.gmra.mrb[20].mxu0 %vm1385_vm14, %v1339_v8  ;;  %v2096_v8 = vmul.f32 %v2081_v25, %v3204_v52  ;;  %v2064_v52 = vpop.permute.xlu0 %2063 }
 0x3cd   :  { %1996 = vmatprep.mubr.f32.mxu0 %v2487_v23 }
 0x3d0   :  { %2244 = vmatmul.mubr.msk.f32.gmra.mrb[22].mxu0 %vm1385_vm14, %v1340_v9 }
 0x497   :  { %v1980_v2 = vpop.f32.mrb[16].mxu0 }
 0x498   :  { %v2317_v23 = vadd.f32 %v1980_v2, %v1292_v10  ;;  %v1982_v59 = vpop.f32.mrb[17].mxu0 }
 0x499   :  { %v2318_v48 = vadd.f32 %v1982_v59, %v1294_v12 }
 0x49a   :  { %v2019_v18 = vmul.f32 0.70710677, %v2317_v23  ;;  %v2011_v42 = vmul.f32 0.5, %v2317_v23  ;;  %v2097_v23 = vmul.f32 %v2085_v54, %v3202_v36 }
 0x49b   :  { %v2020_v19 = vmul.f32 0.70710677, %v2318_v48  ;;  %v1986_v22 = vpop.f32.mrb[18].mxu0  ;;  %v2012_v56 = vmul.f32 0.5, %v2318_v48 }
 0x49c   :  { %2436 = verf.f32 %v2019_v18  ;;  %v2319_v53 = vadd.f32 %v1986_v22, %v1298_v30  ;;  %v1988_v63 = vpop.f32.mrb[19].mxu0  ;;  %v2098_v18 = vmul.f32 %v2085_v54, %v3206_v14 }
 0x49d   :  { %2438 = verf.f32 %v2020_v19  ;;  %v2320_v24 = vadd.f32 %v1988_v63, %v1300_v31 }
 0x49e   :  { %v2021_v26 = vmul.f32 0.70710677, %v2319_v53  ;;  %v2013_v11 = vmul.f32 0.5, %v2319_v53 }
 0x49f   :  { %v2022_v17 = vmul.f32 0.70710677, %v2320_v24  ;;  %v1992_v16 = vpop.f32.mrb[20].mxu0  ;;  %v2014_v9 = vmul.f32 0.5, %v2320_v24 }
 0x4a0   :  { %2440 = verf.f32 %v2021_v26  ;;  %v2321_v47 = vadd.f32 %v1992_v16, %v1304_v60  ;;  %v1994_v51 = vpop.f32.mrb[21].mxu0 }
 0x4a1   :  { %2442 = verf.f32 %v2022_v17  ;;  %v2322_v37 = vadd.f32 %v1994_v51, %v1306_v20  ;;  %v2089_v20 = vpop.permute.xlu1 %2088 }
 0x4a2   :  { %v2023_v3 = vmul.f32 0.70710677, %v2321_v47  ;;  %v2015_v59 = vmul.f32 0.5, %v2321_v47  ;;  %v2099_v17 = vmul.f32 %v2089_v20, %v3212_v57  ;;  %v2100_v16 = vmul.f32 %v2089_v20, %v3216_v27 }
 0x4a3   :  { %v2024_v5 = vmul.f32 0.70710677, %v2322_v37  ;;  %v1998_v4 = vpop.f32.mrb[22].mxu0  ;;  %v2016_v19 = vmul.f32 0.5, %v2322_v37 }
 0x4a4   :  { %2444 = verf.f32 %v2023_v3  ;;  %v2323_v45 = vadd.f32 %v1998_v4, %v1310_v33  ;;  %v2000_v46 = vpop.f32.mrb[23].mxu0 }
 0x4a5   :  { %2446 = verf.f32 %v2024_v5  ;;  %v2324_v55 = vadd.f32 %v2000_v46, %v1312_v15 }
 0x4a6   :  { %v2437_v38 = vpop.eup %2436  ;;  %v2025_v62 = vmul.f32 0.70710677, %v2323_v45  ;;  %v2017_v36 = vmul.f32 0.5, %v2323_v45 }
 0x4a7   :  { %v2439_v50 = vpop.eup %2438  ;;  %v2035_v34 = vadd.f32 1.0, %v2437_v38  ;;  %v2026_v35 = vmul.f32 0.70710677, %v2324_v55  ;;  %v2018_v14 = vmul.f32 0.5, %v2324_v55 }
 0x4a8   :  { %2448 = verf.f32 %v2025_v62  ;;  %v2036_v49 = vadd.f32 1.0, %v2439_v50 }
 0x4a9   :  { %v2043_v39 = vmul.f32 %v2035_v34, %v2011_v42  ;;  %2450 = verf.f32 %v2026_v35  ;;  %v2069_v34 = vpop.permute.xlu0 %2068 }
 0x4aa   :  { %v2441_v44 = vpop.eup %2440  ;;  %v2044_v29 = vmul.f32 %v2036_v49, %v2012_v56 }
 0x4ab   :  { %v2443_v7 = vpop.eup %2442  ;;  %v2071_v32 = vmul.f32 %v2054_v21, %v2043_v39  ;;  %v2037_v40 = vadd.f32 1.0, %v2441_v44 }
 0x4ac   :  { %v2072_v10 = vmul.f32 %v2054_v21, %v2044_v29  ;;  %v2038_v12 = vadd.f32 1.0, %v2443_v7  ;;  %v2093_v21 = vpop.permute.xlu1 %2092 }
 0x4ad   :  { %v2103_v30 = vadd.f32 %v2095_v13, %v2071_v32  ;;  %v2045_v31 = vmul.f32 %v2037_v40, %v2013_v11  ;;  %v2101_v57 = vmul.f32 %v2093_v21, %v3214_v41  ;;  %v2102_v56 = vmul.f32 %v2093_v21, %v3218_v28 }
 0x4ae   :  { %v2445_v60 = vpop.eup %2444  ;;  %v2104_v33 = vadd.f32 %v2096_v8, %v2072_v10  ;;  %v2046_v15 = vmul.f32 %v2038_v12, %v2014_v9 }
 0x4af   :  { %v2447_v2 = vpop.eup %2446  ;;  %v2073_v48 = vmul.f32 %v2059_v61, %v2045_v31  ;;  %v2039_v6 = vadd.f32 1.0, %v2445_v60  ;;  %v2490_v60 = vmov 1966171168  }
 0x4b0   :  { %v2074_v22 = vmul.f32 %v2059_v61, %v2046_v15  ;;  %v2040_v53 = vadd.f32 1.0, %v2447_v2  ;;  %v2141_v20 = vunpack.c.l.s4 %v2490_v60 }
 0x4b1   :  { %v2105_v63 = vadd.f32 %v2097_v23, %v2073_v48  ;;  %v2047_v24 = vmul.f32 %v2039_v6, %v2015_v59 }
 0x4b2   :  { %v2449_v26 = vpop.eup %2448  ;;  %v2106_v51 = vadd.f32 %v2098_v18, %v2074_v22  ;;  %v2048_v25 = vmul.f32 %v2040_v53, %v2016_v19  ;;  %v2142_v15 = vunpack.c.0.s8 %v2141_v20 }
 0x4b3   :  { %v2451_v3 = vpop.eup %2450  ;;  %v2111_v47 = vadd.f32 %v2105_v63, %v2103_v30  ;;  %v2075_v5 = vmul.f32 %v2064_v52, %v2047_v24  ;;  %v2041_v4 = vadd.f32 1.0, %v2449_v26 }
 0x4b4   :  { %v2120_v37 = vadd.f32 %v2106_v51, %v2104_v33  ;;  %v2076_v46 = vmul.f32 %v2064_v52, %v2048_v25  ;;  %v2042_v38 = vadd.f32 1.0, %v2451_v3  ;;  %v2145_v18 = vsub.s32 %v2142_v15, %v2513_v1 }
 0x4b5   :  { %v2107_v62 = vadd.f32 %v2099_v17, %v2075_v5  ;;  %v2049_v50 = vmul.f32 %v2041_v4, %v2017_v36 }
 0x4b6   :  { %v2108_v42 = vadd.f32 %v2100_v16, %v2076_v46  ;;  %v2050_v35 = vmul.f32 %v2042_v38, %v2018_v14 }
 0x4b7   :  { %v2112_v27 = vadd.f32 %v2111_v47, %v2107_v62  ;;  %v2077_v54 = vmul.f32 %v2069_v34, %v2049_v50 }
 0x4b8   :  { %v2121_v45 = vadd.f32 %v2120_v37, %v2108_v42  ;;  %v2078_v49 = vmul.f32 %v2069_v34, %v2050_v35 }
 0x4b9   :  { %v2109_v39 = vadd.f32 %v2101_v57, %v2077_v54 }
 0x4ba   :  { %v2110_v44 = vadd.f32 %v2102_v56, %v2078_v49 }
 0x4bb   :  { %v2113_v29 = vadd.f32 %v2112_v27, %v2109_v39 }
 0x4bc   :  { %v2122_v55 = vadd.f32 %v2121_v45, %v2110_v44 }
 0x4bd   :  { %v2114_v61 = vrot.slane %v2113_v29, 4 }
 0x4be   :  { %v2123_v7 = vrot.slane %v2122_v55, 4 }
 0x4bf   :  { %v2115_v13 = vadd.f32 %v2114_v61, %v2113_v29 }
 0x4c0   :  { %v2124_v11 = vadd.f32 %v2123_v7, %v2122_v55 }
 0x4c1   :  { %v2116_v32 = vrot.slane %v2115_v13, 2 }
 0x4c2   :  { %v2125_v40 = vrot.slane %v2124_v11, 2 }
 0x4c3   :  { %v2117_v8 = vadd.f32 %v2116_v32, %v2115_v13 }
 0x4c4   :  { %v2126_v9 = vadd.f32 %v2125_v40, %v2124_v11 }
 0x4c5   :  { %v2118_v10 = vrot.slane %v2117_v8, 1 }
 0x4c6   :  { %v2127_v41 = vrot.slane %v2126_v9, 1 }
 0x4c7   :  { %v2119_v12 = vadd.f32 %v2118_v10, %v2117_v8 }
 0x4c8   :  { %v2128_v30 = vadd.f32 %v2127_v41, %v2126_v9 }
 0x4c9   :  { %v2129_v28 = vadd.f32 %v2119_v12, %v3267_v43 }
 0x4ca   :  { %v2130_v31 = vadd.f32 %v2128_v30, %v3269_v58 }
 0x4cb   :  { %2452 = vtanh.f32 %v2129_v28 }
 0x4cc   :  { %2454 = vtanh.f32 %v2130_v31 }
 0x4d5   :  { %v2453_v33 = vpop.eup %2452 }
 0x4d6   :  { %v2455_v2 = vpop.eup %2454  ;;  %v2133_v23 = vadd.f32 1.0, %v2453_v33 }
 0x4d7   :  { %v2134_v59 = vadd.f32 1.0, %v2455_v2 }
 0x4d8   :  { %v2135_v48 = vmul.f32 0.5, %v2133_v23 }
 0x4d9   :  { %v2136_v6 = vmul.f32 0.5, %v2134_v59 }
 0x4db   :  { %v2139_v19 = vcombine.low %v2135_v48, %v2136_v6 }
 0x4dd   :  { %v2146_v22 = vrot.slane %v2139_v19, %v2145_v18 }
 0x4df   :  { %v2153_v43 = vrot.slane %v2146_v22, %v2145_v18 }
 0x4e1   :  { %2159 = vst.msk [vmem:[#allocation2] sm:$0x3] %vm2157_vm5, %v2153_v43 }
 0x4e2   :  { %2467 = shalt.err (!%p2464_p4)
}
 0x4e3   :  { %s2468_s14 = scalar_lea.hbm %s3298_s3, 32 }
 0x4e4   :  { %p2469_p5 = scmp.ne.s32.totalorder %s3298_s3, %s2468_s14  ;;  %p2472_p6 = scmp.lt.u32.totalorder %s2468_s14, %s3298_s3 }
 0x4e6   :  { %p2474_p7 = pnand %p2472_p6, %p2469_p5 }
 0x4e8   :  { %2477 = shalt.err (!%p2474_p7)
}
 0x4e9   :  { %2169 = dma.vmem_to_hbm [thread:$0]  %s2167_s11, 32, %s3298_s3, [#allocation3]  }
 0x4ea   :  { %2478 = dma.done.wait [#allocation3], 32  }
 0x4eb   :  { %2479 = vsyncadd [#allocation3], 4294967264 }
 0x4ec   :  { %2173 = vsyncpa [#allocation3], 1 }

</bundles_post_ra>
